<compile_context>
chip_gen: v7x
topology: tpu7x:2x2x1
jax: 0.10.0
libtpu: 0.0.40
codegen_flags: <defaults>
</compile_context>

<pallas_src>
import jax
import jax.numpy as jnp
from jax.experimental import pallas as pl
from jax.experimental.pallas import tpu as pltpu

# Logical layer sizes (torch: Linear(S+A,400), Linear(400,300), Linear(300,1)).
H1 = 400
H2 = 300
# Lane-aligned padded sizes; index H1 / H2 is the "ones carrier" lane that
# folds the next layer's bias into the matmul, everything beyond is zero.
H1_PAD = 512
H2_PAD = 384
W3_ROWS = 8        # fc3 weight row padded to 8 sublanes (row 0 real, rest 0)


def _round_up(x, m):
    return (x + m - 1) // m * m


def _sa_pad(state_dim, action_dim):
    # +1 for the ones column that carries the fc1 bias.
    return _round_up(state_dim + action_dim + 1, 8)


def critic_kernel(sa_ref, w1_ref, w2_ref, w3_ref, q_ref):
    """One batch tile; batch lives in the lane dimension throughout.

    sa_ref : (SA_PAD, TB)     bf16  rows = [state; action; 1; 0...]
    w1_ref : (H1_PAD, SA_PAD) bf16  fc1 W^T, b1 in column S+A, row H1 = carrier
    w2_ref : (H2_PAD, H1_PAD) bf16  fc2 W^T, b2 in column H1, row H2 = carrier
    w3_ref : (8, H2_PAD)      bf16  row 0 = [fc3 weights, fc3 bias, 0...]
    q_ref  : (1, TB)          f32   lane-dense q row for this tile
    """
    # fc1 (+ folded bias) + ReLU.  bf16 operands, f32 MXU accumulation.
    h1 = jnp.dot(w1_ref[...], sa_ref[...], preferred_element_type=jnp.float32)
    h1 = jnp.maximum(h1, 0.0).astype(jnp.bfloat16)            # (H1_PAD, TB)
    # fc2 (+ folded bias) + ReLU.
    h2 = jnp.dot(w2_ref[...], h1, preferred_element_type=jnp.float32)
    h2 = jnp.maximum(h2, 0.0).astype(jnp.bfloat16)            # (H2_PAD, TB)
    # fc3 (+ folded bias) on the MXU; row 0 of the result is q, rows 1..7 = 0.
    q8 = jnp.dot(w3_ref[...], h2, preferred_element_type=jnp.float32)  # (8, TB)
    q_ref[...] = q8[0:1, :]


def init_critic_params(key, state_dim, action_dim):
    """PyTorch-default-like Linear init: uniform(+-1/sqrt(fan_in)).
    Master weights in f32, stored as (in, out)."""
    dims = [(state_dim + action_dim, H1), (H1, H2), (H2, 1)]
    params = {}
    for i, (fan_in, fan_out) in enumerate(dims, start=1):
        key, kw, kb = jax.random.split(key, 3)
        bound = 1.0 / float(fan_in) ** 0.5
        params[f"w{i}"] = jax.random.uniform(
            kw, (fan_in, fan_out), jnp.float32, -bound, bound)
        params[f"b{i}"] = jax.random.uniform(
            kb, (1, fan_out), jnp.float32, -bound, bound)
    return params


def pack_critic_params(params, state_dim, action_dim):
    """One-time prep: transpose, zero-pad to lane multiples, fold biases into
    dedicated carrier lanes, and cast to bf16 for the MXU."""
    S, A = state_dim, action_dim
    SA = S + A
    SA_PAD = _sa_pad(S, A)

    # W1^T with b1 folded (column SA) and the fc2-bias carrier at row H1.
    w1t = jnp.zeros((H1_PAD, SA_PAD), jnp.float32)
    w1t = w1t.at[:H1, :SA].set(params["w1"].T)
    w1t = w1t.at[:H1, SA].set(params["b1"].reshape(-1))
    w1t = w1t.at[H1, SA].set(1.0)        # h1[H1,:] = relu(1*1) = 1

    # W2^T with b2 folded (column H1) and the fc3-bias carrier at row H2.
    w2t = jnp.zeros((H2_PAD, H1_PAD), jnp.float32)
    w2t = w2t.at[:H2, :H1].set(params["w2"].T)
    w2t = w2t.at[:H2, H1].set(params["b2"].reshape(-1))
    w2t = w2t.at[H2, H1].set(1.0)        # h2[H2,:] = relu(1*1) = 1

    # fc3 row with b3 folded (column H2); padded to 8 sublanes for the MXU.
    w3 = jnp.zeros((W3_ROWS, H2_PAD), jnp.float32)
    w3 = w3.at[0, :H2].set(params["w3"].reshape(-1))
    w3 = w3.at[0, H2].set(params["b3"][0, 0])

    return {"w1t": w1t.astype(jnp.bfloat16),
            "w2t": w2t.astype(jnp.bfloat16),
            "w3": w3.astype(jnp.bfloat16)}


def critic_forward(state, action, packed, *, max_tile=1024):
    """Fused TD3-critic forward. state: (B, S), action: (B, A) -> (B, 1) f32."""
    B, S = state.shape
    A = action.shape[1]
    SA = S + A
    SA_PAD = packed["w1t"].shape[1]

    # ---- batch tiling ----------------------------------------------------
    # Small batch: one grid step (v5e/v6e: minimize ~0.35us/step overhead).
    # Larger batch: an EVEN number of 128-aligned lane tiles so v7x's two
    # TensorCores both get work; at batch 256 that's 2 tiles of 128.
    B8 = _round_up(B, 8)
    if B8 < 256:
        num_tiles, TB = 1, B8
    else:
        num_tiles = 2 * pl.cdiv(B8, 2 * max_tile)
        TB = _round_up(pl.cdiv(B8, num_tiles), 128)
    B_pad = num_tiles * TB

    # ---- build the transposed, bias-carrying input (fuses in XLA) ---------
    sa = jnp.concatenate(
        [state.astype(jnp.float32), action.astype(jnp.float32)], axis=1)
    sa = jnp.pad(sa, ((0, B_pad - B), (0, SA_PAD - SA)))
    sa = sa.at[:, SA].set(1.0)                 # ones column -> fc1 bias
    sa_t = sa.T.astype(jnp.bfloat16)           # (SA_PAD, B_pad), batch in lanes

    w1t, w2t, w3 = packed["w1t"], packed["w2t"], packed["w3"]

    flops = 2 * B_pad * (SA_PAD * H1_PAD + H1_PAD * H2_PAD + H2_PAD * W3_ROWS)
    bytes_accessed = (sa_t.size * 2 + w1t.size * 2 + w2t.size * 2
                      + w3.size * 2 + num_tiles * TB * 4)

    const = lambda i: (0, 0)   # weights stay VMEM-resident across the grid

    q_rows = pl.pallas_call(
        critic_kernel,
        out_shape=jax.ShapeDtypeStruct((num_tiles, TB), jnp.float32),
        grid=(num_tiles,),
        in_specs=[
            pl.BlockSpec((SA_PAD, TB), lambda i: (0, i)),    # input batch tile
            pl.BlockSpec((H1_PAD, SA_PAD), const),           # W1^T (+b1)
            pl.BlockSpec((H2_PAD, H1_PAD), const),           # W2^T (+b2)
            pl.BlockSpec((W3_ROWS, H2_PAD), const),          # W3   (+b3)
        ],
        out_specs=pl.BlockSpec((1, TB), lambda i: (i, 0)),   # lane-dense q row
        compiler_params=pltpu.CompilerParams(
            dimension_semantics=("parallel",)),
        cost_estimate=pl.CostEstimate(
            flops=flops, transcendentals=0, bytes_accessed=bytes_accessed),
    )(sa_t, w1t, w2t, w3)

    return q_rows.reshape(B_pad, 1)[:B]


def critic_forward_ref(state, action, packed):
    """Pure-JAX reference with the same bf16 quantization / bias folding as the
    kernel (bf16 weight storage is the only deviation from fp32 torch math)."""
    SA = state.shape[1] + action.shape[1]
    SA_PAD = packed["w1t"].shape[1]
    sa = jnp.concatenate(
        [state.astype(jnp.float32), action.astype(jnp.float32)], axis=1)
    sa = jnp.pad(sa, ((0, 0), (0, SA_PAD - SA)))
    sa = sa.at[:, SA].set(1.0)
    sa = sa.astype(jnp.bfloat16)
    h1 = jnp.maximum(jnp.dot(sa, packed["w1t"].T,
                             preferred_element_type=jnp.float32), 0.0)
    h1 = h1.astype(jnp.bfloat16)
    h2 = jnp.maximum(jnp.dot(h1, packed["w2t"].T,
                             preferred_element_type=jnp.float32), 0.0)
    h2 = h2.astype(jnp.bfloat16)
    return jnp.dot(h2, packed["w3"][0:1].T, preferred_element_type=jnp.float32)


if __name__ == "__main__":
    # BipedalWalker-v2: state_dim=24, action_dim=4.
    state_dim, action_dim = 24, 4

    key = jax.random.PRNGKey(0)
    key, k_params = jax.random.split(key)
    params = init_critic_params(k_params, state_dim, action_dim)
    packed = pack_critic_params(params, state_dim, action_dim)

    fwd = jax.jit(critic_forward)

    # batch=8 exercises the single-tile path; batch=256 the 2-tile (v7x) path.
    for batch in (8, 256):
        k_s, k_a = jax.random.split(jax.random.fold_in(key, batch))
        state = jax.random.normal(k_s, (batch, state_dim), jnp.float32)
        action = jax.random.normal(k_a, (batch, action_dim), jnp.float32)

        q = fwd(state, action, packed)
        jax.block_until_ready(q)

        q_ref = critic_forward_ref(state, action, packed)
        assert q.shape == (batch, 1)
        max_err = float(jnp.max(jnp.abs(q - q_ref)))
        assert max_err < 2e-3, f"batch={batch}: max abs err = {max_err}"

    print("KERNEL_OK")
</pallas_src>

<mosaic_0001>
module attributes {stable_mosaic.version = 11 : i64} {
  func.func @critic_kernel(%arg0: i32, %arg1: memref<32x8xbf16, #tpu.memory_space<vmem>>, %arg2: memref<512x32xbf16, #tpu.memory_space<vmem>>, %arg3: memref<384x512xbf16, #tpu.memory_space<vmem>>, %arg4: memref<8x384xbf16, #tpu.memory_space<vmem>>, %arg5: memref<1x8xf32, #tpu.memory_space<vmem>>) attributes {dimension_semantics = [#tpu.dimension_semantics<parallel>], iteration_bounds = array<i64: 1>, scalar_prefetch = 0 : i64, scratch_operands = 0 : i64, tpu.core_type = #tpu.core_type<tc>, window_params = [{transform_indices = @transform_0, window_bounds = array<i64: 32, 8>}, {pipeline_mode = #tpu.pipeline_mode<synchronous>, transform_indices = @transform_1, window_bounds = array<i64: 512, 32>}, {pipeline_mode = #tpu.pipeline_mode<synchronous>, transform_indices = @transform_2, window_bounds = array<i64: 384, 512>}, {pipeline_mode = #tpu.pipeline_mode<synchronous>, transform_indices = @transform_3, window_bounds = array<i64: 8, 384>}, {transform_indices = @transform_4, window_bounds = array<i64: 1, 8>}]} {
    %c0 = arith.constant 0 : index
    %c0_0 = arith.constant 0 : index
    %0 = vector.load %arg2[%c0, %c0_0] : memref<512x32xbf16, #tpu.memory_space<vmem>>, vector<512x32xbf16>
    %c0_1 = arith.constant 0 : index
    %c0_2 = arith.constant 0 : index
    %1 = vector.load %arg1[%c0_1, %c0_2] : memref<32x8xbf16, #tpu.memory_space<vmem>>, vector<32x8xbf16>
    %cst = arith.constant dense<0.000000e+00> : vector<512x8xf32>
    %2 = tpu.matmul %0, %1, %cst {dimension_numbers = #tpu.dot_dimension_numbers<[1], [0], [0], [1], [0, 0, 1, 1], [], []>} : vector<512x32xbf16>, vector<32x8xbf16>, vector<512x8xf32> -> vector<512x8xf32>
    %cst_3 = arith.constant 0.000000e+00 : f32
    %3 = vector.broadcast %cst_3 : f32 to vector<512x8xf32>
    %4 = arith.maximumf %2, %3 : vector<512x8xf32>
    %5 = arith.truncf %4 : vector<512x8xf32> to vector<512x8xbf16>
    %c0_4 = arith.constant 0 : index
    %c0_5 = arith.constant 0 : index
    %6 = vector.load %arg3[%c0_4, %c0_5] : memref<384x512xbf16, #tpu.memory_space<vmem>>, vector<384x512xbf16>
    %cst_6 = arith.constant dense<0.000000e+00> : vector<384x8xf32>
    %7 = tpu.matmul %6, %5, %cst_6 {dimension_numbers = #tpu.dot_dimension_numbers<[1], [0], [0], [1], [0, 0, 1, 1], [], []>} : vector<384x512xbf16>, vector<512x8xbf16>, vector<384x8xf32> -> vector<384x8xf32>
    %cst_7 = arith.constant 0.000000e+00 : f32
    %8 = vector.broadcast %cst_7 : f32 to vector<384x8xf32>
    %9 = arith.maximumf %7, %8 : vector<384x8xf32>
    %10 = arith.truncf %9 : vector<384x8xf32> to vector<384x8xbf16>
    %c0_8 = arith.constant 0 : index
    %c0_9 = arith.constant 0 : index
    %11 = vector.load %arg4[%c0_8, %c0_9] : memref<8x384xbf16, #tpu.memory_space<vmem>>, vector<8x384xbf16>
    %cst_10 = arith.constant dense<0.000000e+00> : vector<8x8xf32>
    %12 = tpu.matmul %11, %10, %cst_10 {dimension_numbers = #tpu.dot_dimension_numbers<[1], [0], [0], [1], [0, 0, 1, 1], [], []>} : vector<8x384xbf16>, vector<384x8xbf16>, vector<8x8xf32> -> vector<8x8xf32>
    %13 = vector.extract_strided_slice %12 {offsets = [0, 0], sizes = [1, 8], strides = [1, 1]} : vector<8x8xf32> to vector<1x8xf32>
    %c0_11 = arith.constant 0 : index
    %c0_12 = arith.constant 0 : index
    %14 = vector.load %arg5[%c0_11, %c0_12] : memref<1x8xf32, #tpu.memory_space<vmem>>, vector<1x8xf32>
    tpu.vector_store %arg5[%c0_11, %c0_12], %13 {strides = array<i32>} : memref<1x8xf32, #tpu.memory_space<vmem>>, vector<1x8xf32>,
    return
  }
  func.func @transform_0(%arg0: i32) -> (i32, i32) {
    %c0_i32 = arith.constant 0 : i32
    %c0_i32_0 = arith.constant 0 : i32
    return %c0_i32, %arg0 : i32, i32
  }
  func.func @transform_1(%arg0: i32) -> (i32, i32) {
    %c0_i32 = arith.constant 0 : i32
    %c0_i32_0 = arith.constant 0 : i32
    %c0_i32_1 = arith.constant 0 : i32
    return %c0_i32, %c0_i32_0 : i32, i32
  }
  func.func @transform_2(%arg0: i32) -> (i32, i32) {
    %c0_i32 = arith.constant 0 : i32
    %c0_i32_0 = arith.constant 0 : i32
    %c0_i32_1 = arith.constant 0 : i32
    return %c0_i32, %c0_i32_0 : i32, i32
  }
  func.func @transform_3(%arg0: i32) -> (i32, i32) {
    %c0_i32 = arith.constant 0 : i32
    %c0_i32_0 = arith.constant 0 : i32
    %c0_i32_1 = arith.constant 0 : i32
    return %c0_i32, %c0_i32_0 : i32, i32
  }
  func.func @transform_4(%arg0: i32) -> (i32, i32) {
    %c0_i32 = arith.constant 0 : i32
    %c0_i32_0 = arith.constant 0 : i32
    return %arg0, %c0_i32 : i32, i32
  }
}

</mosaic_0001>

<bundles_post_ra>
// kernel: critic_forward.1
= control target key start
LH: loop header
LB: loop body
LE: loop exit
PB: predicated region body
PF: predicated region fallthrough
CT: control target
= control target key end

     0   :  { %9 = vsyncpa [#allocation3], 0  ;;  %s2969_s0 = inlined_call_operand.vmem [shape: bf16[32,8], index: 0, kind: input, shape index: {}]   ;;  %s2970_s1 = inlined_call_operand.vmem [shape: bf16[512,32], index: 1, kind: input, shape index: {}]   ;;  %s2971_s2 = inlined_call_operand.hbm [shape: bf16[384,512], index: 2, kind: input, shape index: {}]   ;;  %s2972_s3 = inlined_call_operand.vmem [shape: bf16[8,384], index: 3, kind: input, shape index: {}]   ;;  %s2973_s4 = inlined_call_operand.hbm [shape: f32[1,8], index: 4, kind: output, shape index: {}]  }
   0x1   :  { %10 = vsyncpa [#allocation4], 0  ;;  %s2611_s15 = smov [#allocation2]   ;;  %s2563_s19 = scalar_lea.hbm %s2971_s2, 12288 }
   0x2   :  { %s20_s16 = sshll.u32 %s2611_s15, 4  ;;  %p2564_p0 = scmp.ne.s32.totalorder %s2971_s2, %s2563_s19  ;;  %s21_s16 = int_to_ptr.vmem [resolvable:$true] %s20_s16 }
   0x3   :  { %p2567_p1 = scmp.lt.u32.totalorder %s2563_s19, %s2971_s2 }
   0x5   :  { %p2569_p2 = pnand %p2567_p1, %p2564_p0 }
   0x7   :  { %2572 = shalt.err (!%p2569_p2)
}
   0x8   :  { %s2573_s24 = scalar_lea.vmem %s21_s16, 12288  ;;  %p2578_p4 = scmp.lt.s32.totalorder %s21_s16, %s21_s16 }
   0x9   :  { %p2574_p3 = scmp.ne.s32.totalorder %s21_s16, %s2573_s24  ;;  %p2579_p5 = scmp.lt.s32.totalorder %s2573_s24, %s2573_s24 }
   0xb   :  { %p2580_p6 = por %p2579_p5, %p2578_p4 }
   0xd   :  { %p2581_p7 = pnand %p2580_p6, %p2574_p3 }
   0xf   :  { %2584 = shalt.err (!%p2581_p7)
}
  0x10   :  { %s2612_s25 = smov 256   ;;  %s2613_s26 = smov 16  }
  0x11   :  { %26 = dma.hbm_to_vmem [thread:$0]  %s2971_s2, 12288, %s21_s16, [#allocation3], %s2612_s25, %s2612_s25, %s2613_s26  }
  0x12   :  { %2607 = dma.done.wait [#allocation3], 12288  }
  0x13   :  { %2608 = vsyncadd [#allocation3], 4294955008  ;;  %v2382_v0 = vld [vmem:[%s2969_s0] sm:$0xff]   ;;  %v2383_v1 = vld [vmem:[%s2969_s0 + $0x8] sm:$0xff]   ;;  %vm273_vm0 = vcmask 261120   ;;  %v2614_v27 = vmov 0  }
  0x14   :  { %2193 = vmatprep.subr.bf16.mxu0 %v2382_v0  ;;  %v2384_v2 = vld [vmem:[%s2970_s1] sm:$0xff]   ;;  %v2385_v3 = vld [vmem:[%s2970_s1 + $0x8] sm:$0xff]   ;;  %v2386_v4 = vld [vmem:[%s2970_s1 + $0x10] sm:$0xff]   ;;  %1331 = vmatprep.subr.bf16.mxu1 %v2614_v27  ;;  %vm2616_vm1 = vmmov 0   ;;  %s2617_s16 = smov [#allocation5]   ;;  %vm1946_vm2 = vcmask 57344  }
  0x15   :  { %2194 = vmatpush3.bf16.msra.mxu0 %v2382_v0  ;;  %2197 = vmatprep.mubr.msk.bf16.mxu0 %vm273_vm0, %v2384_v2  ;;  %v2387_v5 = vld [vmem:[%s2970_s1 + $0x18] sm:$0xff]   ;;  %v2388_v6 = vld [vmem:[%s2970_s1 + $0x20] sm:$0xff]   ;;  %v2389_v7 = vld [vmem:[%s2970_s1 + $0x28] sm:$0xff]   ;;  %s1954_s17 = sshll.u32 %s2617_s16, 4  ;;  %s1955_s17 = int_to_ptr.vmem [resolvable:$true] %s1954_s17 }
  0x16   :  { %2195 = vmatprep.subr.bf16.mxu0 %v2383_v1  ;;  %v2390_v8 = vld [vmem:[%s2970_s1 + $0x30] sm:$0xff]   ;;  %v2391_v9 = vld [vmem:[%s2970_s1 + $0x38] sm:$0xff]   ;;  %v2392_v10 = vld [vmem:[%s2970_s1 + $0x40] sm:$0xff]   ;;  %s2585_s18 = scalar_lea.vmem %s1955_s17, 16  ;;  %p2590_p9 = scmp.lt.s32.totalorder %s1955_s17, %s1955_s17 }
  0x17   :  { %v2393_v11 = vld [vmem:[%s2970_s1 + $0x48] sm:$0xff]   ;;  %v2394_v12 = vld [vmem:[%s2970_s1 + $0x50] sm:$0xff]   ;;  %v2395_v13 = vld [vmem:[%s2970_s1 + $0x58] sm:$0xff]   ;;  %p2586_p8 = scmp.ne.s32.totalorder %s1955_s17, %s2585_s18 }
  0x18   :  { %v2396_v14 = vld [vmem:[%s2970_s1 + $0x60] sm:$0xff]   ;;  %v2397_v15 = vld [vmem:[%s2970_s1 + $0x68] sm:$0xff]   ;;  %v2398_v16 = vld [vmem:[%s2970_s1 + $0x70] sm:$0xff]  }
  0x19   :  { %2196 = vmatpush3.bf16.msra.mxu0 %v2383_v1  ;;  %v2399_v17 = vld [vmem:[%s2970_s1 + $0x78] sm:$0xff]   ;;  %v2400_v18 = vld [vmem:[%s2970_s1 + $0x80] sm:$0xff]   ;;  %v2401_v19 = vld [vmem:[%s2970_s1 + $0x88] sm:$0xff]  }
  0x1a   :  { %v2402_v20 = vld [vmem:[%s2970_s1 + $0x90] sm:$0xff]   ;;  %v2403_v21 = vld [vmem:[%s2970_s1 + $0x98] sm:$0xff]   ;;  %v2404_v22 = vld [vmem:[%s2970_s1 + $0xa0] sm:$0xff]   ;;  %1556 = vmatprep.subr.bf16.mxu0 %v2614_v27 }
  0x1b   :  { %v2405_v23 = vld [vmem:[%s2970_s1 + $0xa8] sm:$0xff]   ;;  %v2406_v24 = vld [vmem:[%s2970_s1 + $0xb0] sm:$0xff]   ;;  %v2407_v25 = vld [vmem:[%s2970_s1 + $0xb8] sm:$0xff]  }
  0x1c   :  { %2198 = vmatmul.mubr.msk.bf16.vlgmr.msra.gmra.mrb[0].mxu0 %vm273_vm0, %v2385_v3  ;;  %v2408_v26 = vld [vmem:[%s2970_s1 + $0xc0] sm:$0xff]   ;;  %v2409_v28 = vld [vmem:[%s2970_s1 + $0xc8] sm:$0xff]   ;;  %v2410_v29 = vld [vmem:[%s2970_s1 + $0xd0] sm:$0xff]  }
  0x1d   :  { %2201 = vmatprep.mubr.msk.bf16.mxu0 %vm273_vm0, %v2386_v4  ;;  %v2411_v30 = vld [vmem:[%s2970_s1 + $0xd8] sm:$0xff]   ;;  %v2412_v31 = vld [vmem:[%s2970_s1 + $0xe0] sm:$0xff]   ;;  %v2413_v32 = vld [vmem:[%s2970_s1 + $0xe8] sm:$0xff]  }
  0x1e   :  { %v2414_v33 = vld [vmem:[%s2970_s1 + $0xf0] sm:$0xff]   ;;  %v2415_v34 = vld [vmem:[%s2970_s1 + $0xf8] sm:$0xff]  }
  0x1f   :  { %v2418_v35 = vld [vmem:[#allocation2 + $0x4] ss:$16 sps:$4 sm:$0xff]   ;;  %v2444_v45 = vld [vmem:[#allocation2 + $0xc] ss:$16 sps:$4 sm:$0xff]  }
  0x20   :  { %1363 = vmatprep.mubr.bf16.mxu1 %v2418_v35 }
  0x24   :  { %2202 = vmatmul.mubr.msk.bf16.gmra.mrb[4].mxu0 %vm273_vm0, %v2387_v5 }
  0x25   :  { %2205 = vmatprep.mubr.msk.bf16.mxu0 %vm273_vm0, %v2388_v6 }
  0x2c   :  { %2206 = vmatmul.mubr.msk.bf16.gmra.mrb[8].mxu0 %vm273_vm0, %v2389_v7 }
  0x2d   :  { %2209 = vmatprep.mubr.msk.bf16.mxu0 %vm273_vm0, %v2390_v8 }
  0x34   :  { %2210 = vmatmul.mubr.msk.bf16.gmra.mrb[12].mxu0 %vm273_vm0, %v2391_v9 }
  0x35   :  { %2213 = vmatprep.mubr.msk.bf16.mxu0 %vm273_vm0, %v2392_v10 }
  0x3c   :  { %2214 = vmatmul.mubr.msk.bf16.gmra.mrb[16].mxu0 %vm273_vm0, %v2393_v11 }
  0x3d   :  { %2217 = vmatprep.mubr.msk.bf16.mxu0 %vm273_vm0, %v2394_v12 }
  0x44   :  { %2218 = vmatmul.mubr.msk.bf16.gmra.mrb[20].mxu0 %vm273_vm0, %v2395_v13 }
  0x45   :  { %2221 = vmatprep.mubr.msk.bf16.mxu0 %vm273_vm0, %v2396_v14 }
  0x4c   :  { %2222 = vmatmul.mubr.msk.bf16.gmra.mrb[24].mxu0 %vm273_vm0, %v2397_v15 }
  0x4d   :  { %2225 = vmatprep.mubr.msk.bf16.mxu0 %vm273_vm0, %v2398_v16 }
  0x54   :  { %2226 = vmatmul.mubr.msk.bf16.gmra.mrb[28].mxu0 %vm273_vm0, %v2399_v17 }
  0x55   :  { %2229 = vmatprep.mubr.msk.bf16.mxu0 %vm273_vm0, %v2400_v18 }
  0x5c   :  { %2230 = vmatmul.mubr.msk.bf16.gmra.mrb[32].mxu0 %vm273_vm0, %v2401_v19 }
  0x5d   :  { %2233 = vmatprep.mubr.msk.bf16.mxu0 %vm273_vm0, %v2402_v20 }
  0x64   :  { %2234 = vmatmul.mubr.msk.bf16.gmra.mrb[36].mxu0 %vm273_vm0, %v2403_v21 }
  0x65   :  { %2237 = vmatprep.mubr.msk.bf16.mxu0 %vm273_vm0, %v2404_v22 }
  0x6c   :  { %2238 = vmatmul.mubr.msk.bf16.gmra.mrb[40].mxu0 %vm273_vm0, %v2405_v23 }
  0x6d   :  { %2241 = vmatprep.mubr.msk.bf16.mxu0 %vm273_vm0, %v2406_v24 }
  0x74   :  { %2242 = vmatmul.mubr.msk.bf16.gmra.mrb[44].mxu0 %vm273_vm0, %v2407_v25 }
  0x75   :  { %2245 = vmatprep.mubr.msk.bf16.mxu0 %vm273_vm0, %v2408_v26 }
  0x7c   :  { %2246 = vmatmul.mubr.msk.bf16.gmra.mrb[48].mxu0 %vm273_vm0, %v2409_v28 }
  0x7d   :  { %2249 = vmatprep.mubr.msk.bf16.mxu0 %vm273_vm0, %v2410_v29 }
  0x84   :  { %2250 = vmatmul.mubr.msk.bf16.gmra.mrb[52].mxu0 %vm273_vm0, %v2411_v30 }
  0x85   :  { %2253 = vmatprep.mubr.msk.bf16.mxu0 %vm273_vm0, %v2412_v31 }
  0x8c   :  { %2254 = vmatmul.mubr.msk.bf16.gmra.mrb[56].mxu0 %vm273_vm0, %v2413_v32 }
  0x8d   :  { %2257 = vmatprep.mubr.msk.bf16.mxu0 %vm273_vm0, %v2414_v33 }
  0x94   :  { %2258 = vmatmul.mubr.msk.bf16.gmra.mrb[60].mxu0 %vm273_vm0, %v2415_v34 }
  0x95   :  { %1588 = vmatprep.mubr.bf16.mxu0 %v2444_v45 }
  0xef   :  { %v2199_v36 = vpop.f32.mrb[0].mxu0 }
  0xf0   :  { %v404_v37 = vpop.f32.mrb[1].mxu0  ;;  %v661_v39 = vmax.f32 %v2199_v36, 0.0 }
  0xf1   :  { %v2200_v38 = vpop.f32.mrb[2].mxu0  ;;  %v659_v42 = vmax.f32 %v404_v37, 0.0 }
  0xf2   :  { %v662_v40 = vmax.f32 %v2200_v38, 0.0  ;;  %v407_v41 = vpop.f32.mrb[3].mxu0 }
  0xf3   :  { %v660_v43 = vmax.f32 %v407_v41, 0.0 }
  0xf4   :  { %v724_v44 = vpack.c.bf16 %v662_v40, %v661_v39 }
  0xf5   :  { %v723_v46 = vpack.c.bf16 %v660_v43, %v659_v42 }
  0xf7   :  { %v2203_v47 = vpop.f32.mrb[4].mxu0  ;;  %1332 = vmatpush1.bf16.msra.mxu1 %v723_v46 }
  0xf8   :  { %v420_v48 = vpop.f32.mrb[5].mxu0  ;;  %1333 = vmatprep.subr.bf16.mxu1 %v2614_v27  ;;  %v665_v50 = vmax.f32 %v2203_v47, 0.0 }
  0xf9   :  { %v2204_v49 = vpop.f32.mrb[6].mxu0  ;;  %v663_v53 = vmax.f32 %v420_v48, 0.0 }
  0xfa   :  { %v666_v51 = vmax.f32 %v2204_v49, 0.0  ;;  %v423_v52 = vpop.f32.mrb[7].mxu0 }
  0xfb   :  { %v664_v54 = vmax.f32 %v423_v52, 0.0  ;;  %1334 = vmatpush1.bf16.msra.mxu1 %v724_v44 }
  0xfc   :  { %v726_v55 = vpack.c.bf16 %v666_v51, %v665_v50  ;;  %1335 = vmatprep.subr.bf16.mxu1 %v2614_v27 }
  0xfd   :  { %v725_v56 = vpack.c.bf16 %v664_v54, %v663_v53 }
  0xff   :  { %v2207_v57 = vpop.f32.mrb[8].mxu0  ;;  %1336 = vmatpush1.bf16.msra.mxu1 %v725_v56 }
 0x100   :  { %v436_v58 = vpop.f32.mrb[9].mxu0  ;;  %1337 = vmatprep.subr.bf16.mxu1 %v2614_v27  ;;  %v669_v60 = vmax.f32 %v2207_v57, 0.0 }
 0x101   :  { %v2208_v59 = vpop.f32.mrb[10].mxu0  ;;  %v667_v63 = vmax.f32 %v436_v58, 0.0 }
 0x102   :  { %v670_v61 = vmax.f32 %v2208_v59, 0.0  ;;  %v439_v62 = vpop.f32.mrb[11].mxu0 }
 0x103   :  { %v668_v0 = vmax.f32 %v439_v62, 0.0  ;;  %1338 = vmatpush1.bf16.msra.mxu1 %v726_v55 }
 0x104   :  { %v728_v1 = vpack.c.bf16 %v670_v61, %v669_v60  ;;  %1339 = vmatprep.subr.bf16.mxu1 %v2614_v27  ;;  %v2416_v61 = vld [vmem:[#allocation2] ss:$16 sps:$4 sm:$0xff]  }
 0x105   :  { %v727_v2 = vpack.c.bf16 %v668_v0, %v667_v63 }
 0x107   :  { %v2211_v3 = vpop.f32.mrb[12].mxu0  ;;  %1340 = vmatpush1.bf16.msra.mxu1 %v727_v2 }
 0x108   :  { %v452_v4 = vpop.f32.mrb[13].mxu0  ;;  %1341 = vmatprep.subr.bf16.mxu1 %v2614_v27  ;;  %v673_v6 = vmax.f32 %v2211_v3, 0.0 }
 0x109   :  { %v2212_v5 = vpop.f32.mrb[14].mxu0  ;;  %v671_v9 = vmax.f32 %v452_v4, 0.0 }
 0x10a   :  { %v674_v7 = vmax.f32 %v2212_v5, 0.0  ;;  %v455_v8 = vpop.f32.mrb[15].mxu0 }
 0x10b   :  { %v672_v10 = vmax.f32 %v455_v8, 0.0  ;;  %1342 = vmatpush1.bf16.msra.mxu1 %v728_v1  ;;  %v2419_v1 = vld [vmem:[#allocation2 + $0x24] ss:$16 sps:$4 sm:$0xff]  }
 0x10c   :  { %v730_v11 = vpack.c.bf16 %v674_v7, %v673_v6  ;;  %1343 = vmatprep.subr.bf16.mxu1 %v2614_v27 }
 0x10d   :  { %v729_v12 = vpack.c.bf16 %v672_v10, %v671_v9  ;;  %v2421_v9 = vld [vmem:[#allocation2 + $0x20] ss:$16 sps:$4 sm:$0xff]  }
 0x10f   :  { %v2215_v13 = vpop.f32.mrb[16].mxu0  ;;  %1344 = vmatpush1.bf16.msra.mxu1 %v729_v12 }
 0x110   :  { %v468_v14 = vpop.f32.mrb[17].mxu0  ;;  %1345 = vmatprep.subr.bf16.mxu1 %v2614_v27  ;;  %v677_v16 = vmax.f32 %v2215_v13, 0.0  ;;  %v2422_v13 = vld [vmem:[#allocation2 + $0x44] ss:$16 sps:$4 sm:$0xff]  }
 0x111   :  { %v2216_v15 = vpop.f32.mrb[18].mxu0  ;;  %v675_v19 = vmax.f32 %v468_v14, 0.0 }
 0x112   :  { %v678_v17 = vmax.f32 %v2216_v15, 0.0  ;;  %v471_v18 = vpop.f32.mrb[19].mxu0 }
 0x113   :  { %v676_v20 = vmax.f32 %v471_v18, 0.0  ;;  %1346 = vmatpush1.bf16.msra.mxu1 %v730_v11 }
 0x114   :  { %v732_v21 = vpack.c.bf16 %v678_v17, %v677_v16  ;;  %1347 = vmatprep.subr.bf16.mxu1 %v2614_v27 }
 0x115   :  { %v731_v22 = vpack.c.bf16 %v676_v20, %v675_v19 }
 0x117   :  { %v2219_v23 = vpop.f32.mrb[20].mxu0  ;;  %1348 = vmatpush1.bf16.msra.mxu1 %v731_v22 }
 0x118   :  { %v484_v24 = vpop.f32.mrb[21].mxu0  ;;  %1349 = vmatprep.subr.bf16.mxu1 %v2614_v27  ;;  %v681_v26 = vmax.f32 %v2219_v23, 0.0 }
 0x119   :  { %v2220_v25 = vpop.f32.mrb[22].mxu0  ;;  %v679_v30 = vmax.f32 %v484_v24, 0.0 }
 0x11a   :  { %v682_v28 = vmax.f32 %v2220_v25, 0.0  ;;  %v487_v29 = vpop.f32.mrb[23].mxu0  ;;  %v2425_v25 = vld [vmem:[#allocation2 + $0x64] ss:$16 sps:$4 sm:$0xff]  }
 0x11b   :  { %v680_v31 = vmax.f32 %v487_v29, 0.0  ;;  %1350 = vmatpush1.bf16.msra.mxu1 %v732_v21  ;;  %v2424_v21 = vld [vmem:[#allocation2 + $0x40] ss:$16 sps:$4 sm:$0xff]  }
 0x11c   :  { %v734_v32 = vpack.c.bf16 %v682_v28, %v681_v26  ;;  %1351 = vmatprep.subr.bf16.mxu1 %v2614_v27 }
 0x11d   :  { %v733_v33 = vpack.c.bf16 %v680_v31, %v679_v30 }
 0x11f   :  { %v2223_v34 = vpop.f32.mrb[24].mxu0  ;;  %1352 = vmatpush1.bf16.msra.mxu1 %v733_v33 }
 0x120   :  { %v500_v35 = vpop.f32.mrb[25].mxu0  ;;  %1353 = vmatprep.subr.bf16.mxu1 %v2614_v27  ;;  %v685_v37 = vmax.f32 %v2223_v34, 0.0  ;;  %v2427_v34 = vld [vmem:[#allocation2 + $0x60] ss:$16 sps:$4 sm:$0xff]  }
 0x121   :  { %v2224_v36 = vpop.f32.mrb[26].mxu0  ;;  %v683_v40 = vmax.f32 %v500_v35, 0.0 }
 0x122   :  { %v686_v38 = vmax.f32 %v2224_v36, 0.0  ;;  %v503_v39 = vpop.f32.mrb[27].mxu0 }
 0x123   :  { %v684_v41 = vmax.f32 %v503_v39, 0.0  ;;  %1354 = vmatpush1.bf16.msra.mxu1 %v734_v32 }
 0x124   :  { %v736_v42 = vpack.c.bf16 %v686_v38, %v685_v37  ;;  %1355 = vmatprep.subr.bf16.mxu1 %v2614_v27  ;;  %v2428_v38 = vld [vmem:[#allocation2 + $0x84] ss:$16 sps:$4 sm:$0xff]  }
 0x125   :  { %v735_v43 = vpack.c.bf16 %v684_v41, %v683_v40 }
 0x127   :  { %v2227_v44 = vpop.f32.mrb[28].mxu0  ;;  %1356 = vmatpush1.bf16.msra.mxu1 %v735_v43 }
 0x128   :  { %v516_v45 = vpop.f32.mrb[29].mxu0  ;;  %1357 = vmatprep.subr.bf16.mxu1 %v2614_v27  ;;  %v689_v47 = vmax.f32 %v2227_v44, 0.0 }
 0x129   :  { %v2228_v46 = vpop.f32.mrb[30].mxu0  ;;  %v687_v50 = vmax.f32 %v516_v45, 0.0 }
 0x12a   :  { %v690_v48 = vmax.f32 %v2228_v46, 0.0  ;;  %v519_v49 = vpop.f32.mrb[31].mxu0  ;;  %v2430_v46 = vld [vmem:[#allocation2 + $0x80] ss:$16 sps:$4 sm:$0xff]  }
 0x12b   :  { %v688_v51 = vmax.f32 %v519_v49, 0.0  ;;  %1358 = vmatpush1.bf16.msra.mxu1 %v736_v42 }
 0x12c   :  { %v738_v52 = vpack.c.bf16 %v690_v48, %v689_v47  ;;  %1359 = vmatprep.subr.bf16.mxu1 %v2614_v27 }
 0x12d   :  { %v737_v53 = vpack.c.bf16 %v688_v51, %v687_v50  ;;  %v2431_v50 = vld [vmem:[#allocation2 + $0xa4] ss:$16 sps:$4 sm:$0xff]  }
 0x12f   :  { %v2231_v54 = vpop.f32.mrb[32].mxu0  ;;  %1360 = vmatpush1.bf16.msra.mxu1 %v737_v53 }
 0x130   :  { %v693_v55 = vmax.f32 %v2231_v54, 0.0  ;;  %v532_v56 = vpop.f32.mrb[33].mxu0  ;;  %1361 = vmatprep.subr.bf16.mxu1 %v2614_v27 }
 0x131   :  { %v691_v57 = vmax.f32 %v532_v56, 0.0  ;;  %v2232_v58 = vpop.f32.mrb[34].mxu0 }
 0x132   :  { %v694_v59 = vmax.f32 %v2232_v58, 0.0  ;;  %v535_v60 = vpop.f32.mrb[35].mxu0  ;;  %v2433_v58 = vld [vmem:[#allocation2 + $0xa0] ss:$16 sps:$4 sm:$0xff]  }
 0x133   :  { %v692_v62 = vmax.f32 %v535_v60, 0.0  ;;  %1362 = vmatpush1.bf16.msra.mxu1 %v738_v52 }
 0x134   :  { %v740_v63 = vpack.c.bf16 %v694_v59, %v693_v55  ;;  %2281 = vmatprep.subr.bf16.mxu1 %v2614_v27 }
 0x135   :  { %v739_v0 = vpack.c.bf16 %v692_v62, %v691_v57  ;;  %v2434_v62 = vld [vmem:[#allocation2 + $0xc4] ss:$16 sps:$4 sm:$0xff]  }
 0x136   :  { %1364 = vmatmul.mubr.bf16.vlgmr.msra.gmra.mrb[0].mxu1 %v2416_v61 }
 0x137   :  { %v2235_v2 = vpop.f32.mrb[36].mxu0  ;;  %1557 = vmatpush1.bf16.msra.mxu0 %v739_v0  ;;  %2297 = vmatpush1.bf16.msra.mxu1 %v739_v0 }
 0x138   :  { %v697_v3 = vmax.f32 %v2235_v2, 0.0  ;;  %v548_v4 = vpop.f32.mrb[37].mxu0  ;;  %1558 = vmatprep.subr.bf16.mxu0 %v2614_v27  ;;  %2282 = vmatprep.subr.bf16.mxu1 %v2614_v27 }
 0x139   :  { %v695_v5 = vmax.f32 %v548_v4, 0.0  ;;  %v2236_v6 = vpop.f32.mrb[38].mxu0  ;;  %1371 = vmatprep.mubr.bf16.mxu1 %v2419_v1 }
 0x13a   :  { %v698_v7 = vmax.f32 %v2236_v6, 0.0  ;;  %v551_v8 = vpop.f32.mrb[39].mxu0  ;;  %v2436_v6 = vld [vmem:[#allocation2 + $0xc0] ss:$16 sps:$4 sm:$0xff]  }
 0x13b   :  { %v696_v10 = vmax.f32 %v551_v8, 0.0  ;;  %1559 = vmatpush1.bf16.msra.mxu0 %v740_v63  ;;  %2298 = vmatpush1.bf16.msra.mxu1 %v740_v63 }
 0x13c   :  { %v742_v11 = vpack.c.bf16 %v698_v7, %v697_v3  ;;  %1560 = vmatprep.subr.bf16.mxu0 %v2614_v27  ;;  %2283 = vmatprep.subr.bf16.mxu1 %v2614_v27 }
 0x13d   :  { %v741_v12 = vpack.c.bf16 %v696_v10, %v695_v5  ;;  %v2437_v10 = vld [vmem:[#allocation2 + $0xe4] ss:$16 sps:$4 sm:$0xff]  }
 0x13e   :  { %1372 = vmatmul.mubr.bf16.gmra.mrb[4].mxu1 %v2421_v9 }
 0x13f   :  { %v2239_v14 = vpop.f32.mrb[40].mxu0  ;;  %1561 = vmatpush1.bf16.msra.mxu0 %v741_v12  ;;  %2299 = vmatpush1.bf16.msra.mxu1 %v741_v12 }
 0x140   :  { %v701_v15 = vmax.f32 %v2239_v14, 0.0  ;;  %v564_v16 = vpop.f32.mrb[41].mxu0  ;;  %1562 = vmatprep.subr.bf16.mxu0 %v2614_v27  ;;  %2284 = vmatprep.subr.bf16.mxu1 %v2614_v27 }
 0x141   :  { %v699_v17 = vmax.f32 %v564_v16, 0.0  ;;  %v2240_v18 = vpop.f32.mrb[42].mxu0  ;;  %1379 = vmatprep.mubr.bf16.mxu1 %v2422_v13 }
 0x142   :  { %v702_v19 = vmax.f32 %v2240_v18, 0.0  ;;  %v567_v20 = vpop.f32.mrb[43].mxu0  ;;  %v2439_v18 = vld [vmem:[#allocation2 + $0xe0] ss:$16 sps:$4 sm:$0xff]  }
 0x143   :  { %v700_v22 = vmax.f32 %v567_v20, 0.0  ;;  %1563 = vmatpush1.bf16.msra.mxu0 %v742_v11  ;;  %2300 = vmatpush1.bf16.msra.mxu1 %v742_v11 }
 0x144   :  { %v744_v23 = vpack.c.bf16 %v702_v19, %v701_v15  ;;  %1564 = vmatprep.subr.bf16.mxu0 %v2614_v27  ;;  %2285 = vmatprep.subr.bf16.mxu1 %v2614_v27 }
 0x145   :  { %v743_v24 = vpack.c.bf16 %v700_v22, %v699_v17  ;;  %v2440_v22 = vld [vmem:[#allocation2 + $0x104] ss:$16 sps:$4 sm:$0xff]  }
 0x146   :  { %1380 = vmatmul.mubr.bf16.gmra.mrb[8].mxu1 %v2424_v21 }
 0x147   :  { %v2243_v26 = vpop.f32.mrb[44].mxu0  ;;  %1565 = vmatpush1.bf16.msra.mxu0 %v743_v24  ;;  %2301 = vmatpush1.bf16.msra.mxu1 %v743_v24  ;;  %v2445_v24 = vld [vmem:[#allocation2 + $0x100] ss:$16 sps:$4 sm:$0xff]  }
 0x148   :  { %v705_v28 = vmax.f32 %v2243_v26, 0.0  ;;  %v580_v29 = vpop.f32.mrb[45].mxu0  ;;  %1566 = vmatprep.subr.bf16.mxu0 %v2614_v27  ;;  %2286 = vmatprep.subr.bf16.mxu1 %v2614_v27  ;;  %v2448_v26 = vld [vmem:[#allocation2 + $0x2c] ss:$16 sps:$4 sm:$0xff]  }
 0x149   :  { %v703_v30 = vmax.f32 %v580_v29, 0.0  ;;  %v2244_v31 = vpop.f32.mrb[46].mxu0  ;;  %1387 = vmatprep.mubr.bf16.mxu1 %v2425_v25  ;;  %v2446_v25 = vld [vmem:[#allocation2 + $0x124] ss:$16 sps:$4 sm:$0xff]   ;;  %v2451_v29 = vld [vmem:[#allocation2 + $0x28] ss:$16 sps:$4 sm:$0xff]  }
 0x14a   :  { %v706_v32 = vmax.f32 %v2244_v31, 0.0  ;;  %v583_v33 = vpop.f32.mrb[47].mxu0  ;;  %v2454_v31 = vld [vmem:[#allocation2 + $0x4c] ss:$16 sps:$4 sm:$0xff]  }
 0x14b   :  { %v704_v35 = vmax.f32 %v583_v33, 0.0  ;;  %1567 = vmatpush1.bf16.msra.mxu0 %v744_v23  ;;  %2302 = vmatpush1.bf16.msra.mxu1 %v744_v23  ;;  %v2442_v23 = vld [vmem:[#allocation2 + $0x8] ss:$16 sps:$4 sm:$0xff]   ;;  %v2458_v33 = vld [vmem:[#allocation2 + $0x164] ss:$16 sps:$4 sm:$0xff]  }
 0x14c   :  { %v746_v36 = vpack.c.bf16 %v706_v32, %v705_v28  ;;  %1568 = vmatprep.subr.bf16.mxu0 %v2614_v27  ;;  %2287 = vmatprep.subr.bf16.mxu1 %v2614_v27  ;;  %v2450_v28 = vld [vmem:[#allocation2 + $0x120] ss:$16 sps:$4 sm:$0xff]   ;;  %v2457_v32 = vld [vmem:[#allocation2 + $0x48] ss:$16 sps:$4 sm:$0xff]  }
 0x14d   :  { %v745_v37 = vpack.c.bf16 %v704_v35, %v703_v30  ;;  %v2452_v30 = vld [vmem:[#allocation2 + $0x144] ss:$16 sps:$4 sm:$0xff]   ;;  %v2462_v35 = vld [vmem:[#allocation2 + $0x160] ss:$16 sps:$4 sm:$0xff]  }
 0x14e   :  { %1388 = vmatmul.mubr.bf16.gmra.mrb[12].mxu1 %v2427_v34  ;;  %v2460_v34 = vld [vmem:[#allocation2 + $0x6c] ss:$16 sps:$4 sm:$0xff]  }
 0x14f   :  { %v2247_v39 = vpop.f32.mrb[48].mxu0  ;;  %1569 = vmatpush1.bf16.msra.mxu0 %v745_v37  ;;  %2303 = vmatpush1.bf16.msra.mxu1 %v745_v37  ;;  %v2464_v37 = vld [vmem:[#allocation2 + $0x184] ss:$16 sps:$4 sm:$0xff]  }
 0x150   :  { %v709_v40 = vmax.f32 %v2247_v39, 0.0  ;;  %v596_v41 = vpop.f32.mrb[49].mxu0  ;;  %1570 = vmatprep.subr.bf16.mxu0 %v2614_v27  ;;  %2288 = vmatprep.subr.bf16.mxu1 %v2614_v27  ;;  %v2468_v39 = vld [vmem:[#allocation2 + $0x180] ss:$16 sps:$4 sm:$0xff]  }
 0x151   :  { %v707_v42 = vmax.f32 %v596_v41, 0.0  ;;  %v2248_v43 = vpop.f32.mrb[50].mxu0  ;;  %1395 = vmatprep.mubr.bf16.mxu1 %v2428_v38  ;;  %v2466_v38 = vld [vmem:[#allocation2 + $0x8c] ss:$16 sps:$4 sm:$0xff]   ;;  %v2470_v41 = vld [vmem:[#allocation2 + $0x1a4] ss:$16 sps:$4 sm:$0xff]  }
 0x152   :  { %v710_v44 = vmax.f32 %v2248_v43, 0.0  ;;  %v599_v45 = vpop.f32.mrb[51].mxu0  ;;  %v2474_v43 = vld [vmem:[#allocation2 + $0x1a0] ss:$16 sps:$4 sm:$0xff]  }
 0x153   :  { %v708_v47 = vmax.f32 %v599_v45, 0.0  ;;  %1571 = vmatpush1.bf16.msra.mxu0 %v746_v36  ;;  %2304 = vmatpush1.bf16.msra.mxu1 %v746_v36  ;;  %v2463_v36 = vld [vmem:[#allocation2 + $0x68] ss:$16 sps:$4 sm:$0xff]   ;;  %v2476_v45 = vld [vmem:[#allocation2 + $0x1c4] ss:$16 sps:$4 sm:$0xff]  }
 0x154   :  { %v748_v48 = vpack.c.bf16 %v710_v44, %v709_v40  ;;  %1572 = vmatprep.subr.bf16.mxu0 %v2614_v27  ;;  %2289 = vmatprep.subr.bf16.mxu1 %v2614_v27  ;;  %v2469_v40 = vld [vmem:[#allocation2 + $0x88] ss:$16 sps:$4 sm:$0xff]  }
 0x155   :  { %v747_v49 = vpack.c.bf16 %v708_v47, %v707_v42  ;;  %v2472_v42 = vld [vmem:[#allocation2 + $0xac] ss:$16 sps:$4 sm:$0xff]   ;;  %v2475_v44 = vld [vmem:[#allocation2 + $0xa8] ss:$16 sps:$4 sm:$0xff]   ;;  %v2480_v47 = vld [vmem:[#allocation2 + $0x1c0] ss:$16 sps:$4 sm:$0xff]  }
 0x156   :  { %1396 = vmatmul.mubr.bf16.gmra.mrb[16].mxu1 %v2430_v46  ;;  %v2478_v46 = vld [vmem:[#allocation2 + $0xcc] ss:$16 sps:$4 sm:$0xff]  }
 0x157   :  { %v2251_v51 = vpop.f32.mrb[52].mxu0  ;;  %1573 = vmatpush1.bf16.msra.mxu0 %v747_v49  ;;  %2305 = vmatpush1.bf16.msra.mxu1 %v747_v49  ;;  %v2482_v49 = vld [vmem:[#allocation2 + $0x1e4] ss:$16 sps:$4 sm:$0xff]  }
 0x158   :  { %v713_v52 = vmax.f32 %v2251_v51, 0.0  ;;  %v612_v53 = vpop.f32.mrb[53].mxu0  ;;  %1574 = vmatprep.subr.bf16.mxu0 %v2614_v27  ;;  %2290 = vmatprep.subr.bf16.mxu1 %v2614_v27  ;;  %v2486_v51 = vld [vmem:[#allocation2 + $0x1e0] ss:$16 sps:$4 sm:$0xff]  }
 0x159   :  { %v711_v54 = vmax.f32 %v612_v53, 0.0  ;;  %v2252_v55 = vpop.f32.mrb[54].mxu0  ;;  %1403 = vmatprep.mubr.bf16.mxu1 %v2431_v50  ;;  %v2484_v50 = vld [vmem:[#allocation2 + $0xec] ss:$16 sps:$4 sm:$0xff]   ;;  %v2488_v53 = vld [vmem:[#allocation2 + $0x204] ss:$16 sps:$4 sm:$0xff]  }
 0x15a   :  { %v714_v56 = vmax.f32 %v2252_v55, 0.0  ;;  %v615_v57 = vpop.f32.mrb[55].mxu0  ;;  %v2492_v55 = vld [vmem:[#allocation2 + $0x200] ss:$16 sps:$4 sm:$0xff]  }
 0x15b   :  { %v712_v59 = vmax.f32 %v615_v57, 0.0  ;;  %1575 = vmatpush1.bf16.msra.mxu0 %v748_v48  ;;  %2306 = vmatpush1.bf16.msra.mxu1 %v748_v48  ;;  %v2481_v48 = vld [vmem:[#allocation2 + $0xc8] ss:$16 sps:$4 sm:$0xff]   ;;  %v2494_v57 = vld [vmem:[#allocation2 + $0x224] ss:$16 sps:$4 sm:$0xff]  }
 0x15c   :  { %v750_v60 = vpack.c.bf16 %v714_v56, %v713_v52  ;;  %1576 = vmatprep.subr.bf16.mxu0 %v2614_v27  ;;  %2291 = vmatprep.subr.bf16.mxu1 %v2614_v27  ;;  %v2487_v52 = vld [vmem:[#allocation2 + $0xe8] ss:$16 sps:$4 sm:$0xff]  }
 0x15d   :  { %v749_v61 = vpack.c.bf16 %v712_v59, %v711_v54  ;;  %v2490_v54 = vld [vmem:[#allocation2 + $0x10c] ss:$16 sps:$4 sm:$0xff]   ;;  %v2493_v56 = vld [vmem:[#allocation2 + $0x108] ss:$16 sps:$4 sm:$0xff]   ;;  %v2498_v59 = vld [vmem:[#allocation2 + $0x220] ss:$16 sps:$4 sm:$0xff]  }
 0x15e   :  { %1404 = vmatmul.mubr.bf16.gmra.mrb[20].mxu1 %v2433_v58  ;;  %v2496_v58 = vld [vmem:[#allocation2 + $0x12c] ss:$16 sps:$4 sm:$0xff]  }
 0x15f   :  { %v2255_v63 = vpop.f32.mrb[56].mxu0  ;;  %1577 = vmatpush1.bf16.msra.mxu0 %v749_v61  ;;  %2307 = vmatpush1.bf16.msra.mxu1 %v749_v61  ;;  %v2500_v61 = vld [vmem:[#allocation2 + $0x244] ss:$16 sps:$4 sm:$0xff]  }
 0x160   :  { %v717_v0 = vmax.f32 %v2255_v63, 0.0  ;;  %v628_v1 = vpop.f32.mrb[57].mxu0  ;;  %1578 = vmatprep.subr.bf16.mxu0 %v2614_v27  ;;  %2292 = vmatprep.subr.bf16.mxu1 %v2614_v27  ;;  %v2504_v63 = vld [vmem:[#allocation2 + $0x240] ss:$16 sps:$4 sm:$0xff]  }
 0x161   :  { %v715_v2 = vmax.f32 %v628_v1, 0.0  ;;  %v2256_v3 = vpop.f32.mrb[58].mxu0  ;;  %1411 = vmatprep.mubr.bf16.mxu1 %v2434_v62  ;;  %v2502_v62 = vld [vmem:[#allocation2 + $0x14c] ss:$16 sps:$4 sm:$0xff]   ;;  %v2506_v1 = vld [vmem:[#allocation2 + $0x264] ss:$16 sps:$4 sm:$0xff]  }
 0x162   :  { %v718_v4 = vmax.f32 %v2256_v3, 0.0  ;;  %v631_v5 = vpop.f32.mrb[59].mxu0  ;;  %v2510_v3 = vld [vmem:[#allocation2 + $0x260] ss:$16 sps:$4 sm:$0xff]  }
 0x163   :  { %v716_v7 = vmax.f32 %v631_v5, 0.0  ;;  %1579 = vmatpush1.bf16.msra.mxu0 %v750_v60  ;;  %2308 = vmatpush1.bf16.msra.mxu1 %v750_v60  ;;  %v2499_v60 = vld [vmem:[#allocation2 + $0x128] ss:$16 sps:$4 sm:$0xff]   ;;  %v2512_v5 = vld [vmem:[#allocation2 + $0x284] ss:$16 sps:$4 sm:$0xff]  }
 0x164   :  { %v752_v8 = vpack.c.bf16 %v718_v4, %v717_v0  ;;  %1580 = vmatprep.subr.bf16.mxu0 %v2614_v27  ;;  %2293 = vmatprep.subr.bf16.mxu1 %v2614_v27  ;;  %v2505_v0 = vld [vmem:[#allocation2 + $0x148] ss:$16 sps:$4 sm:$0xff]  }
 0x165   :  { %v751_v9 = vpack.c.bf16 %v716_v7, %v715_v2  ;;  %v2508_v2 = vld [vmem:[#allocation2 + $0x16c] ss:$16 sps:$4 sm:$0xff]   ;;  %v2511_v4 = vld [vmem:[#allocation2 + $0x168] ss:$16 sps:$4 sm:$0xff]   ;;  %v2516_v7 = vld [vmem:[#allocation2 + $0x280] ss:$16 sps:$4 sm:$0xff]  }
 0x166   :  { %1412 = vmatmul.mubr.bf16.gmra.mrb[24].mxu1 %v2436_v6  ;;  %v2514_v6 = vld [vmem:[#allocation2 + $0x18c] ss:$16 sps:$4 sm:$0xff]  }
 0x167   :  { %v2259_v11 = vpop.f32.mrb[60].mxu0  ;;  %1581 = vmatpush1.bf16.msra.mxu0 %v751_v9  ;;  %2309 = vmatpush1.bf16.msra.mxu1 %v751_v9  ;;  %v2518_v9 = vld [vmem:[#allocation2 + $0x2a4] ss:$16 sps:$4 sm:$0xff]  }
 0x168   :  { %v721_v12 = vmax.f32 %v2259_v11, 0.0  ;;  %v644_v13 = vpop.f32.mrb[61].mxu0  ;;  %1582 = vmatprep.subr.bf16.mxu0 %v2614_v27  ;;  %2294 = vmatprep.subr.bf16.mxu1 %v2614_v27  ;;  %v2522_v11 = vld [vmem:[#allocation2 + $0x2a0] ss:$16 sps:$4 sm:$0xff]  }
 0x169   :  { %v719_v14 = vmax.f32 %v644_v13, 0.0  ;;  %v2260_v15 = vpop.f32.mrb[62].mxu0  ;;  %1419 = vmatprep.mubr.bf16.mxu1 %v2437_v10  ;;  %v2520_v10 = vld [vmem:[#allocation2 + $0x1ac] ss:$16 sps:$4 sm:$0xff]   ;;  %v2524_v13 = vld [vmem:[#allocation2 + $0x2c4] ss:$16 sps:$4 sm:$0xff]  }
 0x16a   :  { %v722_v16 = vmax.f32 %v2260_v15, 0.0  ;;  %v647_v17 = vpop.f32.mrb[63].mxu0  ;;  %v2528_v15 = vld [vmem:[#allocation2 + $0x2c0] ss:$16 sps:$4 sm:$0xff]  }
 0x16b   :  { %v720_v19 = vmax.f32 %v647_v17, 0.0  ;;  %1583 = vmatpush1.bf16.msra.mxu0 %v752_v8  ;;  %2310 = vmatpush1.bf16.msra.mxu1 %v752_v8  ;;  %v2517_v8 = vld [vmem:[#allocation2 + $0x188] ss:$16 sps:$4 sm:$0xff]   ;;  %v2530_v17 = vld [vmem:[#allocation2 + $0x2e4] ss:$16 sps:$4 sm:$0xff]  }
 0x16c   :  { %v754_v20 = vpack.c.bf16 %v722_v16, %v721_v12  ;;  %1584 = vmatprep.subr.bf16.mxu0 %v2614_v27  ;;  %2295 = vmatprep.subr.bf16.mxu1 %v2614_v27  ;;  %v2523_v12 = vld [vmem:[#allocation2 + $0x1a8] ss:$16 sps:$4 sm:$0xff]  }
 0x16d   :  { %v753_v21 = vpack.c.bf16 %v720_v19, %v719_v14  ;;  %v2526_v14 = vld [vmem:[#allocation2 + $0x1cc] ss:$16 sps:$4 sm:$0xff]   ;;  %v2529_v16 = vld [vmem:[#allocation2 + $0x1c8] ss:$16 sps:$4 sm:$0xff]   ;;  %v2534_v19 = vld [vmem:[#allocation2 + $0x2e0] ss:$16 sps:$4 sm:$0xff]  }
 0x16e   :  { %1420 = vmatmul.mubr.bf16.gmra.mrb[28].mxu1 %v2439_v18  ;;  %v2532_v18 = vld [vmem:[#allocation2 + $0x1ec] ss:$16 sps:$4 sm:$0xff]  }
 0x16f   :  { %1585 = vmatpush1.bf16.msra.mxu0 %v753_v21  ;;  %2311 = vmatpush1.bf16.msra.mxu1 %v753_v21  ;;  %v2536_v21 = vld [vmem:[#allocation2 + $0x20c] ss:$16 sps:$4 sm:$0xff]  }
 0x170   :  { %1586 = vmatprep.subr.bf16.mxu0 %v2614_v27  ;;  %2296 = vmatprep.subr.bf16.mxu1 %v2614_v27  ;;  %v2456_v27 = vld [vmem:[#allocation2 + $0x140] ss:$16 sps:$4 sm:$0xff]  }
 0x171   :  { %1427 = vmatprep.mubr.bf16.mxu1 %v2440_v22  ;;  %v2540_v22 = vld [vmem:[#allocation2 + $0x22c] ss:$16 sps:$4 sm:$0xff]  }
 0x173   :  { %1587 = vmatpush1.bf16.msra.mxu0 %v754_v20  ;;  %2312 = vmatpush1.bf16.msra.mxu1 %v754_v20  ;;  %v2535_v20 = vld [vmem:[#allocation2 + $0x1e8] ss:$16 sps:$4 sm:$0xff]  }
 0x176   :  { %1428 = vmatmul.mubr.bf16.gmra.mrb[32].mxu1 %v2445_v24  ;;  %1589 = vmatmul.mubr.bf16.vlgmr.msra.gmra.mrb[64].mxu0 %v2442_v23  ;;  %v2538_v23 = vld [vmem:[#allocation2 + $0x228] ss:$16 sps:$4 sm:$0xff]  }
 0x177   :  { %1435 = vmatprep.mubr.bf16.mxu1 %v2446_v25  ;;  %1596 = vmatprep.mubr.bf16.mxu0 %v2448_v26  ;;  %v2541_v24 = vld [vmem:[#allocation2 + $0x208] ss:$16 sps:$4 sm:$0xff]   ;;  %v2542_v25 = vld [vmem:[#allocation2 + $0x24c] ss:$16 sps:$4 sm:$0xff]  }
 0x178   :  { %v2544_v26 = vld [vmem:[#allocation2 + $0x248] ss:$16 sps:$4 sm:$0xff]  }
 0x17e   :  { %1436 = vmatmul.mubr.bf16.gmra.mrb[36].mxu1 %v2450_v28  ;;  %1597 = vmatmul.mubr.bf16.gmra.mrb[68].mxu0 %v2451_v29  ;;  %v2545_v28 = vld [vmem:[#allocation2 + $0x26c] ss:$16 sps:$4 sm:$0xff]   ;;  %v2547_v29 = vld [vmem:[#allocation2 + $0x268] ss:$16 sps:$4 sm:$0xff]  }
 0x17f   :  { %1443 = vmatprep.mubr.bf16.mxu1 %v2452_v30  ;;  %1604 = vmatprep.mubr.bf16.mxu0 %v2454_v31  ;;  %v2548_v30 = vld [vmem:[#allocation2 + $0x28c] ss:$16 sps:$4 sm:$0xff]  }
 0x186   :  { %1444 = vmatmul.mubr.bf16.gmra.mrb[40].mxu1 %v2456_v27  ;;  %1605 = vmatmul.mubr.bf16.gmra.mrb[72].mxu0 %v2457_v32  ;;  %v2550_v27 = vld [vmem:[#allocation2 + $0x288] ss:$16 sps:$4 sm:$0xff]  }
 0x187   :  { %1451 = vmatprep.mubr.bf16.mxu1 %v2458_v33  ;;  %1612 = vmatprep.mubr.bf16.mxu0 %v2460_v34  ;;  %v2551_v33 = vld [vmem:[#allocation2 + $0x2ac] ss:$16 sps:$4 sm:$0xff]  }
 0x18e   :  { %1452 = vmatmul.mubr.bf16.gmra.mrb[44].mxu1 %v2462_v35  ;;  %1613 = vmatmul.mubr.bf16.gmra.mrb[76].mxu0 %v2463_v36 }
 0x18f   :  { %1459 = vmatprep.mubr.bf16.mxu1 %v2464_v37  ;;  %1620 = vmatprep.mubr.bf16.mxu0 %v2466_v38  ;;  %v2553_v37 = vld [vmem:[#allocation2 + $0x2a8] ss:$16 sps:$4 sm:$0xff]  }
 0x196   :  { %1460 = vmatmul.mubr.bf16.gmra.mrb[48].mxu1 %v2468_v39  ;;  %1621 = vmatmul.mubr.bf16.gmra.mrb[80].mxu0 %v2469_v40  ;;  %v2554_v39 = vld [vmem:[#allocation2 + $0x2cc] ss:$16 sps:$4 sm:$0xff]  }
 0x197   :  { %1467 = vmatprep.mubr.bf16.mxu1 %v2470_v41  ;;  %1628 = vmatprep.mubr.bf16.mxu0 %v2472_v42 }
 0x19e   :  { %1468 = vmatmul.mubr.bf16.gmra.mrb[52].mxu1 %v2474_v43  ;;  %1629 = vmatmul.mubr.bf16.gmra.mrb[84].mxu0 %v2475_v44  ;;  %v2556_v43 = vld [vmem:[#allocation2 + $0x2c8] ss:$16 sps:$4 sm:$0xff]  }
 0x19f   :  { %1475 = vmatprep.mubr.bf16.mxu1 %v2476_v45  ;;  %1636 = vmatprep.mubr.bf16.mxu0 %v2478_v46  ;;  %v2557_v45 = vld [vmem:[#allocation2 + $0x2ec] ss:$16 sps:$4 sm:$0xff]  }
 0x1a6   :  { %1476 = vmatmul.mubr.bf16.gmra.mrb[56].mxu1 %v2480_v47  ;;  %1637 = vmatmul.mubr.bf16.gmra.mrb[88].mxu0 %v2481_v48 }
 0x1a7   :  { %1483 = vmatprep.mubr.bf16.mxu1 %v2482_v49  ;;  %1644 = vmatprep.mubr.bf16.mxu0 %v2484_v50  ;;  %v2559_v49 = vld [vmem:[#allocation2 + $0x2e8] ss:$16 sps:$4 sm:$0xff]  }
 0x1ae   :  { %1484 = vmatmul.mubr.bf16.gmra.mrb[60].mxu1 %v2486_v51  ;;  %1645 = vmatmul.mubr.bf16.gmra.mrb[92].mxu0 %v2487_v52 }
 0x1af   :  { %1491 = vmatprep.mubr.bf16.mxu1 %v2488_v53  ;;  %1652 = vmatprep.mubr.bf16.mxu0 %v2490_v54 }
 0x1b6   :  { %1492 = vmatmul.mubr.bf16.gmra.mrb[64].mxu1 %v2492_v55  ;;  %1653 = vmatmul.mubr.bf16.gmra.mrb[96].mxu0 %v2493_v56 }
 0x1b7   :  { %1499 = vmatprep.mubr.bf16.mxu1 %v2494_v57  ;;  %1660 = vmatprep.mubr.bf16.mxu0 %v2496_v58 }
 0x1be   :  { %1500 = vmatmul.mubr.bf16.gmra.mrb[68].mxu1 %v2498_v59  ;;  %1661 = vmatmul.mubr.bf16.gmra.mrb[100].mxu0 %v2499_v60 }
 0x1bf   :  { %1507 = vmatprep.mubr.bf16.mxu1 %v2500_v61  ;;  %1668 = vmatprep.mubr.bf16.mxu0 %v2502_v62 }
 0x1c6   :  { %1508 = vmatmul.mubr.bf16.gmra.mrb[72].mxu1 %v2504_v63  ;;  %1669 = vmatmul.mubr.bf16.gmra.mrb[104].mxu0 %v2505_v0 }
 0x1c7   :  { %1515 = vmatprep.mubr.bf16.mxu1 %v2506_v1  ;;  %1676 = vmatprep.mubr.bf16.mxu0 %v2508_v2 }
 0x1ce   :  { %1516 = vmatmul.mubr.bf16.gmra.mrb[76].mxu1 %v2510_v3  ;;  %1677 = vmatmul.mubr.bf16.gmra.mrb[108].mxu0 %v2511_v4 }
 0x1cf   :  { %1523 = vmatprep.mubr.bf16.mxu1 %v2512_v5  ;;  %1684 = vmatprep.mubr.bf16.mxu0 %v2514_v6 }
 0x1d6   :  { %1524 = vmatmul.mubr.bf16.gmra.mrb[80].mxu1 %v2516_v7  ;;  %1685 = vmatmul.mubr.bf16.gmra.mrb[112].mxu0 %v2517_v8 }
 0x1d7   :  { %1531 = vmatprep.mubr.bf16.mxu1 %v2518_v9  ;;  %1692 = vmatprep.mubr.bf16.mxu0 %v2520_v10 }
 0x1de   :  { %1532 = vmatmul.mubr.bf16.gmra.mrb[84].mxu1 %v2522_v11  ;;  %1693 = vmatmul.mubr.bf16.gmra.mrb[116].mxu0 %v2523_v12 }
 0x1df   :  { %1539 = vmatprep.mubr.bf16.mxu1 %v2524_v13  ;;  %1700 = vmatprep.mubr.bf16.mxu0 %v2526_v14 }
 0x1e6   :  { %1540 = vmatmul.mubr.bf16.gmra.mrb[88].mxu1 %v2528_v15  ;;  %1701 = vmatmul.mubr.bf16.gmra.mrb[120].mxu0 %v2529_v16 }
 0x1e7   :  { %1547 = vmatprep.mubr.bf16.mxu1 %v2530_v17  ;;  %1708 = vmatprep.mubr.bf16.mxu0 %v2532_v18  ;;  %v2864_v17 = vld [vmem:[%s2972_s3] sm:$0xff] }
 0x1e8   :  { %v2126_v18 = vcombine.high %v2864_v17, %v2864_v17 }
 0x1ee   :  { %1548 = vmatmul.mubr.bf16.gmra.mrb[92].mxu1 %v2534_v19  ;;  %1709 = vmatmul.mubr.bf16.gmra.mrb[124].mxu0 %v2535_v20 }
 0x1ef   :  { %1716 = vmatprep.mubr.bf16.mxu0 %v2536_v21  ;;  %1724 = vmatprep.mubr.bf16.mxu1 %v2540_v22 }
 0x1f6   :  { %1717 = vmatmul.mubr.bf16.gmra.mrb[128].mxu0 %v2541_v24  ;;  %1725 = vmatmul.mubr.bf16.vlgmr.msra.gmra.mrb[68].mxu1 %v2538_v23 }
 0x1f7   :  { %1732 = vmatprep.mubr.bf16.mxu1 %v2542_v25  ;;  %1898 = vmatprep.mubr.bf16.mxu0 %v2126_v18 }
 0x1fe   :  { %1733 = vmatmul.mubr.bf16.gmra.mrb[72].mxu1 %v2544_v26 }
 0x1ff   :  { %1740 = vmatprep.mubr.bf16.mxu1 %v2545_v28 }
 0x206   :  { %1741 = vmatmul.mubr.bf16.gmra.mrb[76].mxu1 %v2547_v29 }
 0x207   :  { %1748 = vmatprep.mubr.bf16.mxu1 %v2548_v30 }
 0x209   :  { %v1365_v31 = vpop.f32.mrb[0].mxu1 }
 0x20a   :  { %v1367_v32 = vpop.f32.mrb[1].mxu1 }
 0x20b   :  { %v1368_v34 = vpop.f32.mrb[2].mxu1 }
 0x20c   :  { %v1370_v35 = vpop.f32.mrb[3].mxu1 }
 0x20e   :  { %1749 = vmatmul.mubr.bf16.gmra.mrb[80].mxu1 %v2550_v27 }
 0x20f   :  { %1756 = vmatprep.mubr.bf16.mxu1 %v2551_v33 }
 0x211   :  { %v1373_v36 = vpop.f32.mrb[4].mxu1 }
 0x212   :  { %v1375_v38 = vpop.f32.mrb[5].mxu1 }
 0x213   :  { %v1376_v40 = vpop.f32.mrb[6].mxu1 }
 0x214   :  { %v1378_v41 = vpop.f32.mrb[7].mxu1 }
 0x216   :  { %1757 = vmatmul.mubr.bf16.gmra.mrb[84].mxu1 %v2553_v37 }
 0x217   :  { %1764 = vmatprep.mubr.bf16.mxu1 %v2554_v39 }
 0x219   :  { %v1381_v42 = vpop.f32.mrb[8].mxu1 }
 0x21a   :  { %v1383_v44 = vpop.f32.mrb[9].mxu1 }
 0x21b   :  { %v1384_v46 = vpop.f32.mrb[10].mxu1 }
 0x21c   :  { %v1386_v47 = vpop.f32.mrb[11].mxu1 }
 0x21e   :  { %1765 = vmatmul.mubr.bf16.gmra.mrb[88].mxu1 %v2556_v43 }
 0x21f   :  { %1772 = vmatprep.mubr.bf16.mxu1 %v2557_v45 }
 0x221   :  { %v2837_v48 = vpop.f32.mrb[12].mxu1 }
 0x222   :  { %v1391_v50 = vpop.f32.mrb[13].mxu1 }
 0x223   :  { %v2839_v51 = vpop.f32.mrb[14].mxu1 }
 0x224   :  { %v1394_v52 = vpop.f32.mrb[15].mxu1 }
 0x226   :  { %1773 = vmatmul.mubr.bf16.gmra.mrb[92].mxu1 %v2559_v49 }
 0x229   :  { %v2841_v53 = vpop.f32.mrb[16].mxu1 }
 0x22a   :  { %v1399_v54 = vpop.f32.mrb[17].mxu1 }
 0x22b   :  { %v2843_v55 = vpop.f32.mrb[18].mxu1 }
 0x22c   :  { %v1402_v56 = vpop.f32.mrb[19].mxu1 }
 0x231   :  { %v2845_v57 = vpop.f32.mrb[20].mxu1 }
 0x232   :  { %v1407_v58 = vpop.f32.mrb[21].mxu1 }
 0x233   :  { %v2847_v59 = vpop.f32.mrb[22].mxu1 }
 0x234   :  { %v1410_v60 = vpop.f32.mrb[23].mxu1 }
 0x239   :  { %v2849_v61 = vpop.f32.mrb[24].mxu1 }
 0x23a   :  { %v1415_v62 = vpop.f32.mrb[25].mxu1 }
 0x23b   :  { %v2851_v63 = vpop.f32.mrb[26].mxu1 }
 0x23c   :  { %v1418_v0 = vpop.f32.mrb[27].mxu1 }
 0x241   :  { %v2853_v1 = vpop.f32.mrb[28].mxu1 }
 0x242   :  { %v1423_v2 = vpop.f32.mrb[29].mxu1 }
 0x243   :  { %v2855_v3 = vpop.f32.mrb[30].mxu1 }
 0x244   :  { %v1426_v4 = vpop.f32.mrb[31].mxu1 }
 0x249   :  { %v1590_v5 = vpop.f32.mrb[64].mxu0  ;;  %v2857_v6 = vpop.f32.mrb[32].mxu1 }
 0x24a   :  { %v1591_v7 = vadd.f32 %v1590_v5, %v1365_v31  ;;  %v1592_v8 = vpop.f32.mrb[65].mxu0  ;;  %v1431_v9 = vpop.f32.mrb[33].mxu1 }
 0x24b   :  { %v1593_v10 = vpop.f32.mrb[66].mxu0  ;;  %v2859_v11 = vpop.f32.mrb[34].mxu1 }
 0x24c   :  { %v1594_v12 = vadd.f32 %v1593_v10, %v1368_v34  ;;  %v1595_v13 = vpop.f32.mrb[67].mxu0  ;;  %v1434_v14 = vpop.f32.mrb[35].mxu1  ;;  %v1781_v15 = vmax.f32 %v1591_v7, 0.0 }
 0x24e   :  { %v1782_v16 = vmax.f32 %v1594_v12, 0.0 }
 0x250   :  { %v2868_v19 = vpack.c.bf16 %v1782_v16, %v1781_v15 }
 0x251   :  { %v1598_v20 = vpop.f32.mrb[68].mxu0  ;;  %v2870_v21 = vpop.f32.mrb[36].mxu1 }
 0x252   :  { %v1599_v22 = vadd.f32 %v1598_v20, %v1373_v36  ;;  %v1600_v23 = vpop.f32.mrb[69].mxu0  ;;  %v1439_v24 = vpop.f32.mrb[37].mxu1 }
 0x253   :  { %v1601_v25 = vpop.f32.mrb[70].mxu0  ;;  %v2872_v26 = vpop.f32.mrb[38].mxu1 }
 0x254   :  { %v1602_v28 = vadd.f32 %v1601_v25, %v1376_v40  ;;  %v1603_v29 = vpop.f32.mrb[71].mxu0  ;;  %v1442_v30 = vpop.f32.mrb[39].mxu1  ;;  %v1783_v31 = vmax.f32 %v1599_v22, 0.0 }
 0x256   :  { %v1784_v27 = vmax.f32 %v1602_v28, 0.0 }
 0x258   :  { %v2874_v32 = vpack.c.bf16 %v1784_v27, %v1783_v31 }
 0x259   :  { %v1606_v33 = vpop.f32.mrb[72].mxu0  ;;  %v2876_v34 = vpop.f32.mrb[40].mxu1 }
 0x25a   :  { %v1607_v35 = vadd.f32 %v1606_v33, %v1381_v42  ;;  %v1608_v37 = vpop.f32.mrb[73].mxu0  ;;  %v1447_v38 = vpop.f32.mrb[41].mxu1 }
 0x25b   :  { %v1609_v39 = vpop.f32.mrb[74].mxu0  ;;  %v2878_v36 = vpop.f32.mrb[42].mxu1 }
 0x25c   :  { %v1610_v41 = vadd.f32 %v1609_v39, %v1384_v46  ;;  %v1611_v43 = vpop.f32.mrb[75].mxu0  ;;  %v1450_v44 = vpop.f32.mrb[43].mxu1  ;;  %v1785_v45 = vmax.f32 %v1607_v35, 0.0 }
 0x25e   :  { %v1786_v40 = vmax.f32 %v1610_v41, 0.0 }
 0x260   :  { %v2880_v47 = vpack.c.bf16 %v1786_v40, %v1785_v45 }
 0x261   :  { %v1614_v49 = vpop.f32.mrb[76].mxu0  ;;  %v2882_v50 = vpop.f32.mrb[44].mxu1 }
 0x262   :  { %v1615_v52 = vadd.f32 %v1614_v49, %v2837_v48  ;;  %v1616_v54 = vpop.f32.mrb[77].mxu0  ;;  %v1455_v56 = vpop.f32.mrb[45].mxu1 }
 0x263   :  { %v1617_v42 = vpop.f32.mrb[78].mxu0  ;;  %v2885_v58 = vpop.f32.mrb[46].mxu1 }
 0x264   :  { %v1618_v60 = vadd.f32 %v1617_v42, %v2839_v51  ;;  %v1619_v62 = vpop.f32.mrb[79].mxu0  ;;  %v1458_v46 = vpop.f32.mrb[47].mxu1  ;;  %v1787_v0 = vmax.f32 %v1615_v52, 0.0 }
 0x266   :  { %v1788_v2 = vmax.f32 %v1618_v60, 0.0 }
 0x268   :  { %v2888_v4 = vpack.c.bf16 %v1788_v2, %v1787_v0 }
 0x269   :  { %v1622_v5 = vpop.f32.mrb[80].mxu0  ;;  %v2890_v7 = vpop.f32.mrb[48].mxu1 }
 0x26a   :  { %v1623_v8 = vadd.f32 %v1622_v5, %v2841_v53  ;;  %v1624_v9 = vpop.f32.mrb[81].mxu0  ;;  %v1463_v48 = vpop.f32.mrb[49].mxu1 }
 0x26b   :  { %v1625_v10 = vpop.f32.mrb[82].mxu0  ;;  %v2893_v12 = vpop.f32.mrb[50].mxu1 }
 0x26c   :  { %v1626_v13 = vadd.f32 %v1625_v10, %v2843_v55  ;;  %v1627_v14 = vpop.f32.mrb[83].mxu0  ;;  %v1466_v51 = vpop.f32.mrb[51].mxu1  ;;  %v1789_v15 = vmax.f32 %v1623_v8, 0.0 }
 0x26e   :  { %v1790_v16 = vmax.f32 %v1626_v13, 0.0 }
 0x270   :  { %v2896_v18 = vpack.c.bf16 %v1790_v16, %v1789_v15 }
 0x271   :  { %v1630_v20 = vpop.f32.mrb[84].mxu0  ;;  %v2898_v22 = vpop.f32.mrb[52].mxu1 }
 0x272   :  { %v1631_v23 = vadd.f32 %v1630_v20, %v2845_v57  ;;  %v1632_v24 = vpop.f32.mrb[85].mxu0  ;;  %v1471_v53 = vpop.f32.mrb[53].mxu1 }
 0x273   :  { %v1633_v25 = vpop.f32.mrb[86].mxu0  ;;  %v2901_v28 = vpop.f32.mrb[54].mxu1 }
 0x274   :  { %v1634_v29 = vadd.f32 %v1633_v25, %v2847_v59  ;;  %v1635_v30 = vpop.f32.mrb[87].mxu0  ;;  %v1474_v55 = vpop.f32.mrb[55].mxu1  ;;  %v1791_v31 = vmax.f32 %v1631_v23, 0.0 }
 0x276   :  { %v1792_v27 = vmax.f32 %v1634_v29, 0.0 }
 0x278   :  { %v2904_v33 = vpack.c.bf16 %v1792_v27, %v1791_v31 }
 0x279   :  { %v1638_v35 = vpop.f32.mrb[88].mxu0  ;;  %v2906_v37 = vpop.f32.mrb[56].mxu1 }
 0x27a   :  { %v1639_v38 = vadd.f32 %v1638_v35, %v2849_v61  ;;  %v1640_v39 = vpop.f32.mrb[89].mxu0  ;;  %v1479_v57 = vpop.f32.mrb[57].mxu1 }
 0x27b   :  { %v1641_v41 = vpop.f32.mrb[90].mxu0  ;;  %v2909_v43 = vpop.f32.mrb[58].mxu1 }
 0x27c   :  { %v1642_v44 = vadd.f32 %v1641_v41, %v2851_v63  ;;  %v1643_v45 = vpop.f32.mrb[91].mxu0  ;;  %v1482_v59 = vpop.f32.mrb[59].mxu1  ;;  %v1793_v40 = vmax.f32 %v1639_v38, 0.0 }
 0x27e   :  { %v1794_v49 = vmax.f32 %v1642_v44, 0.0 }
 0x280   :  { %v2912_v52 = vpack.c.bf16 %v1794_v49, %v1793_v40 }
 0x281   :  { %v1646_v54 = vpop.f32.mrb[92].mxu0  ;;  %v2914_v56 = vpop.f32.mrb[60].mxu1 }
 0x282   :  { %v1647_v42 = vadd.f32 %v1646_v54, %v2853_v1  ;;  %v1648_v60 = vpop.f32.mrb[93].mxu0  ;;  %v1487_v61 = vpop.f32.mrb[61].mxu1 }
 0x283   :  { %v1649_v62 = vpop.f32.mrb[94].mxu0  ;;  %v2917_v46 = vpop.f32.mrb[62].mxu1 }
 0x284   :  { %v1650_v0 = vadd.f32 %v1649_v62, %v2855_v3  ;;  %v1651_v2 = vpop.f32.mrb[95].mxu0  ;;  %v1490_v63 = vpop.f32.mrb[63].mxu1  ;;  %v1795_v5 = vmax.f32 %v1647_v42, 0.0 }
 0x286   :  { %v1796_v8 = vmax.f32 %v1650_v0, 0.0 }
 0x288   :  { %v2920_v9 = vpack.c.bf16 %v1796_v8, %v1795_v5 }
 0x289   :  { %v1654_v48 = vpop.f32.mrb[96].mxu0  ;;  %v2922_v10 = vpop.f32.mrb[64].mxu1 }
 0x28a   :  { %v1655_v13 = vadd.f32 %v1654_v48, %v2857_v6  ;;  %v1656_v14 = vpop.f32.mrb[97].mxu0  ;;  %v1495_v1 = vpop.f32.mrb[65].mxu1 }
 0x28b   :  { %v1657_v51 = vpop.f32.mrb[98].mxu0  ;;  %v2925_v15 = vpop.f32.mrb[66].mxu1 }
 0x28c   :  { %v1658_v16 = vadd.f32 %v1657_v51, %v2859_v11  ;;  %v1659_v20 = vpop.f32.mrb[99].mxu0  ;;  %v1498_v3 = vpop.f32.mrb[67].mxu1  ;;  %v1797_v23 = vmax.f32 %v1655_v13, 0.0 }
 0x28e   :  { %v1798_v24 = vmax.f32 %v1658_v16, 0.0 }
 0x290   :  { %v1837_v53 = vpack.c.bf16 %v1798_v24, %v1797_v23 }
 0x291   :  { %v1662_v25 = vpop.f32.mrb[100].mxu0 }
 0x292   :  { %v1663_v29 = vadd.f32 %v1662_v25, %v2870_v21  ;;  %v1664_v30 = vpop.f32.mrb[101].mxu0  ;;  %2162 = vmatprep.subr.bf16.mxu0 %v1837_v53 }
 0x293   :  { %v1665_v55 = vpop.f32.mrb[102].mxu0  ;;  %2163 = vmatpush3.bf16.msra.mxu0 %v2868_v19 }
 0x294   :  { %v1666_v6 = vadd.f32 %v1665_v55, %v2872_v26  ;;  %v1667_v31 = vpop.f32.mrb[103].mxu0  ;;  %v1799_v27 = vmax.f32 %v1663_v29, 0.0 }
 0x296   :  { %v1800_v35 = vmax.f32 %v1666_v6, 0.0 }
 0x298   :  { %v1838_v38 = vpack.c.bf16 %v1800_v35, %v1799_v27 }
 0x299   :  { %v1670_v11 = vpop.f32.mrb[104].mxu0 }
 0x29a   :  { %v1671_v39 = vadd.f32 %v1670_v11, %v2876_v34  ;;  %v1672_v57 = vpop.f32.mrb[105].mxu0  ;;  %2164 = vmatprep.subr.bf16.mxu0 %v1838_v38 }
 0x29b   :  { %v1673_v41 = vpop.f32.mrb[106].mxu0  ;;  %2165 = vmatpush3.bf16.msra.mxu0 %v2874_v32 }
 0x29c   :  { %v1674_v21 = vadd.f32 %v1673_v41, %v2878_v36  ;;  %v1675_v44 = vpop.f32.mrb[107].mxu0  ;;  %v1801_v45 = vmax.f32 %v1671_v39, 0.0 }
 0x29e   :  { %v1802_v59 = vmax.f32 %v1674_v21, 0.0 }
 0x2a0   :  { %v1839_v19 = vpack.c.bf16 %v1802_v59, %v1801_v45  ;;  %v2615_v45 = vmov 0.0  }
 0x2a1   :  { %v1678_v40 = vpop.f32.mrb[108].mxu0 }
 0x2a2   :  { %v1679_v26 = vadd.f32 %v1678_v40, %v2882_v50  ;;  %v1680_v49 = vpop.f32.mrb[109].mxu0  ;;  %2166 = vmatprep.subr.bf16.mxu0 %v1839_v19 }
 0x2a3   :  { %v1681_v54 = vpop.f32.mrb[110].mxu0  ;;  %2167 = vmatpush3.bf16.msra.mxu0 %v2880_v47 }
 0x2a4   :  { %v1682_v34 = vadd.f32 %v1681_v54, %v2885_v58  ;;  %v1683_v42 = vpop.f32.mrb[111].mxu0  ;;  %v1803_v60 = vmax.f32 %v1679_v26, 0.0 }
 0x2a6   :  { %v1804_v61 = vmax.f32 %v1682_v34, 0.0 }
 0x2a8   :  { %v1840_v32 = vpack.c.bf16 %v1804_v61, %v1803_v60 }
 0x2a9   :  { %v1686_v62 = vpop.f32.mrb[112].mxu0 }
 0x2aa   :  { %v1687_v36 = vadd.f32 %v1686_v62, %v2890_v7  ;;  %v1688_v0 = vpop.f32.mrb[113].mxu0  ;;  %2168 = vmatprep.subr.bf16.mxu0 %v1840_v32 }
 0x2ab   :  { %v1689_v2 = vpop.f32.mrb[114].mxu0  ;;  %2169 = vmatpush3.bf16.msra.mxu0 %v2888_v4 }
 0x2ac   :  { %v1690_v50 = vadd.f32 %v1689_v2, %v2893_v12  ;;  %v1691_v63 = vpop.f32.mrb[115].mxu0  ;;  %v1805_v5 = vmax.f32 %v1687_v36, 0.0 }
 0x2ae   :  { %v1806_v8 = vmax.f32 %v1690_v50, 0.0 }
 0x2b0   :  { %v1841_v47 = vpack.c.bf16 %v1806_v8, %v1805_v5 }
 0x2b1   :  { %v1694_v48 = vpop.f32.mrb[116].mxu0 }
 0x2b2   :  { %v1695_v58 = vadd.f32 %v1694_v48, %v2898_v22  ;;  %v1696_v13 = vpop.f32.mrb[117].mxu0  ;;  %2170 = vmatprep.subr.bf16.mxu0 %v1841_v47 }
 0x2b3   :  { %v1697_v14 = vpop.f32.mrb[118].mxu0  ;;  %2171 = vmatpush3.bf16.msra.mxu0 %v2896_v18 }
 0x2b4   :  { %v1698_v7 = vadd.f32 %v1697_v14, %v2901_v28  ;;  %v1699_v1 = vpop.f32.mrb[119].mxu0  ;;  %v1807_v51 = vmax.f32 %v1695_v58, 0.0 }
 0x2b6   :  { %v1808_v16 = vmax.f32 %v1698_v7, 0.0 }
 0x2b8   :  { %v1842_v4 = vpack.c.bf16 %v1808_v16, %v1807_v51 }
 0x2b9   :  { %v1702_v20 = vpop.f32.mrb[120].mxu0 }
 0x2ba   :  { %v1703_v12 = vadd.f32 %v1702_v20, %v2906_v37  ;;  %v1704_v3 = vpop.f32.mrb[121].mxu0  ;;  %2172 = vmatprep.subr.bf16.mxu0 %v1842_v4 }
 0x2bb   :  { %v1705_v23 = vpop.f32.mrb[122].mxu0  ;;  %2173 = vmatpush3.bf16.msra.mxu0 %v2904_v33 }
 0x2bc   :  { %v1706_v22 = vadd.f32 %v1705_v23, %v2909_v43  ;;  %v1707_v24 = vpop.f32.mrb[123].mxu0  ;;  %v1809_v53 = vmax.f32 %v1703_v12, 0.0 }
 0x2be   :  { %v1810_v25 = vmax.f32 %v1706_v22, 0.0 }
 0x2c0   :  { %v1843_v18 = vpack.c.bf16 %v1810_v25, %v1809_v53 }
 0x2c1   :  { %v1710_v29 = vpop.f32.mrb[124].mxu0 }
 0x2c2   :  { %v1711_v28 = vadd.f32 %v1710_v29, %v2914_v56  ;;  %v1712_v30 = vpop.f32.mrb[125].mxu0  ;;  %2174 = vmatprep.subr.bf16.mxu0 %v1843_v18  ;;  %v2125_v56 = vcombine.low %v2864_v17, %v2864_v17 }
 0x2c3   :  { %v1713_v55 = vpop.f32.mrb[126].mxu0  ;;  %2175 = vmatpush3.bf16.msra.mxu0 %v2912_v52 }
 0x2c4   :  { %v1714_v37 = vadd.f32 %v1713_v55, %v2917_v46  ;;  %v1715_v6 = vpop.f32.mrb[127].mxu0  ;;  %v1811_v31 = vmax.f32 %v1711_v28, 0.0 }
 0x2c5   :  { %v2562_v6 = vld [vmem:[%s2972_s3 + $0x8] ss:$0 sps:$4 sm:$0xff]   ;;  %s2589_s3 = scalar_lea.vmem %s1955_s17, 32 }
 0x2c6   :  { %v1812_v27 = vmax.f32 %v1714_v37, 0.0  ;;  %p2591_p10 = scmp.lt.s32.totalorder %s2589_s3, %s2585_s18 }
 0x2c8   :  { %v1844_v33 = vpack.c.bf16 %v1812_v27, %v1811_v31  ;;  %p2592_p11 = por %p2591_p10, %p2590_p9 }
 0x2c9   :  { %v1718_v35 = vpop.f32.mrb[128].mxu0  ;;  %v1726_v43 = vpop.f32.mrb[68].mxu1 }
 0x2ca   :  { %v1719_v38 = vadd.f32 %v1718_v35, %v2922_v10  ;;  %v1720_v11 = vpop.f32.mrb[129].mxu0  ;;  %v1728_v39 = vpop.f32.mrb[69].mxu1  ;;  %2176 = vmatprep.subr.bf16.mxu0 %v1844_v33  ;;  %v1815_v52 = vmax.f32 %v1726_v43, 0.0  ;;  %p2593_p12 = pnand %p2592_p11, %p2586_p8 }
 0x2cb   :  { %v1721_v57 = vpop.f32.mrb[130].mxu0  ;;  %v1729_v41 = vpop.f32.mrb[70].mxu1  ;;  %2177 = vmatpush3.bf16.msra.mxu0 %v2920_v9 }
 0x2cc   :  { %v1722_v46 = vadd.f32 %v1721_v57, %v2925_v15  ;;  %v1816_v21 = vmax.f32 %v1729_v41, 0.0  ;;  %v1731_v44 = vpop.f32.mrb[71].mxu1  ;;  %2261 = vmatprep.subr.bf16.mxu0 %v2615_v45  ;;  %v1723_v59 = vpop.f32.mrb[131].mxu0  ;;  %v1813_v19 = vmax.f32 %v1719_v38, 0.0 }
 0x2ce   :  { %v1814_v10 = vmax.f32 %v1722_v46, 0.0  ;;  %v1846_v40 = vpack.c.bf16 %v1816_v21, %v1815_v52  ;;  %1899 = vmatmul.mubr.bf16.vlgmr.msra.gmra.mrb[132].mxu0 %v2125_v56 }
 0x2cf   :  { %2277 = vmatprep.mubr.msk.bf16.mxu0 %vm2616_vm1, %v2615_v45 }
 0x2d0   :  { %v1845_v26 = vpack.c.bf16 %v1814_v10, %v1813_v19 }
 0x2d1   :  { %v1734_v17 = vpop.f32.mrb[72].mxu1 }
 0x2d2   :  { %v1736_v49 = vpop.f32.mrb[73].mxu1  ;;  %2262 = vmatpush3.bf16.msra.mxu0 %v1845_v26  ;;  %v1817_v9 = vmax.f32 %v1734_v17, 0.0 }
 0x2d3   :  { %v1737_v54 = vpop.f32.mrb[74].mxu1  ;;  %2263 = vmatprep.subr.bf16.mxu0 %v2615_v45 }
 0x2d4   :  { %v1818_v34 = vmax.f32 %v1737_v54, 0.0  ;;  %v1739_v15 = vpop.f32.mrb[75].mxu1 }
 0x2d6   :  { %v1847_v42 = vpack.c.bf16 %v1818_v34, %v1817_v9  ;;  %2264 = vmatpush3.bf16.msra.mxu0 %v1846_v40 }
 0x2d7   :  { %2265 = vmatprep.subr.bf16.mxu0 %v2615_v45 }
 0x2d9   :  { %v1742_v60 = vpop.f32.mrb[76].mxu1 }
 0x2da   :  { %v1744_v61 = vpop.f32.mrb[77].mxu1  ;;  %2266 = vmatpush3.bf16.msra.mxu0 %v1847_v42  ;;  %v1819_v62 = vmax.f32 %v1742_v60, 0.0 }
 0x2db   :  { %v1745_v32 = vpop.f32.mrb[78].mxu1  ;;  %2267 = vmatprep.subr.bf16.mxu0 %v2615_v45 }
 0x2dc   :  { %v1820_v36 = vmax.f32 %v1745_v32, 0.0  ;;  %v1747_v0 = vpop.f32.mrb[79].mxu1 }
 0x2de   :  { %v1848_v2 = vpack.c.bf16 %v1820_v36, %v1819_v62 }
 0x2e0   :  { %2268 = vmatpush3.bf16.msra.mxu0 %v1848_v2 }
 0x2e1   :  { %v1750_v50 = vpop.f32.mrb[80].mxu1  ;;  %2269 = vmatprep.subr.bf16.mxu0 %v2615_v45 }
 0x2e2   :  { %v1752_v63 = vpop.f32.mrb[81].mxu1  ;;  %v1821_v8 = vmax.f32 %v1750_v50, 0.0 }
 0x2e3   :  { %v1753_v5 = vpop.f32.mrb[82].mxu1 }
 0x2e4   :  { %v1822_v47 = vmax.f32 %v1753_v5, 0.0  ;;  %v1755_v48 = vpop.f32.mrb[83].mxu1 }
 0x2e6   :  { %v1849_v58 = vpack.c.bf16 %v1822_v47, %v1821_v8 }
 0x2e8   :  { %2270 = vmatpush3.bf16.msra.mxu0 %v1849_v58 }
 0x2e9   :  { %v1758_v13 = vpop.f32.mrb[84].mxu1  ;;  %2271 = vmatprep.subr.bf16.mxu0 %v2615_v45 }
 0x2ea   :  { %v1760_v14 = vpop.f32.mrb[85].mxu1  ;;  %v1823_v1 = vmax.f32 %v1758_v13, 0.0 }
 0x2eb   :  { %v1761_v7 = vpop.f32.mrb[86].mxu1 }
 0x2ec   :  { %v1824_v51 = vmax.f32 %v1761_v7, 0.0  ;;  %v1763_v16 = vpop.f32.mrb[87].mxu1 }
 0x2ee   :  { %v1850_v4 = vpack.c.bf16 %v1824_v51, %v1823_v1 }
 0x2f0   :  { %2272 = vmatpush3.bf16.msra.mxu0 %v1850_v4 }
 0x2f1   :  { %v1766_v20 = vpop.f32.mrb[88].mxu1  ;;  %2273 = vmatprep.subr.bf16.mxu0 %v2615_v45 }
 0x2f2   :  { %v1768_v12 = vpop.f32.mrb[89].mxu1  ;;  %v1825_v23 = vmax.f32 %v1766_v20, 0.0 }
 0x2f3   :  { %v1769_v3 = vpop.f32.mrb[90].mxu1 }
 0x2f4   :  { %v1826_v22 = vmax.f32 %v1769_v3, 0.0  ;;  %v1771_v24 = vpop.f32.mrb[91].mxu1 }
 0x2f6   :  { %v1851_v53 = vpack.c.bf16 %v1826_v22, %v1825_v23 }
 0x2f8   :  { %2274 = vmatpush3.bf16.msra.mxu0 %v1851_v53 }
 0x2f9   :  { %v1774_v25 = vpop.f32.mrb[92].mxu1  ;;  %2275 = vmatprep.subr.bf16.mxu0 %v2615_v45 }
 0x2fa   :  { %v1776_v18 = vpop.f32.mrb[93].mxu1  ;;  %v1827_v28 = vmax.f32 %v1774_v25, 0.0 }
 0x2fb   :  { %v1777_v29 = vpop.f32.mrb[94].mxu1 }
 0x2fc   :  { %v1828_v30 = vmax.f32 %v1777_v29, 0.0  ;;  %v1779_v55 = vpop.f32.mrb[95].mxu1 }
 0x2fe   :  { %v1852_v37 = vpack.c.bf16 %v1828_v30, %v1827_v28 }
 0x300   :  { %2276 = vmatpush3.bf16.msra.mxu0 %v1852_v37 }
 0x303   :  { %2278 = vmatmul.mubr.bf16.vlgmr.msra.gmra.mrb[136].mxu0 %v2562_v6 }
 0x3a1   :  { %v2178_v31 = vpop.f32.mrb[132].mxu0 }
 0x3a2   :  { %v2179_v27 = vpop.f32.mrb[133].mxu0 }
 0x3a3   :  { %v2180_v33 = vadd.f32 %v2179_v27, %v2178_v31  ;;  %v2181_v35 = vpop.f32.mrb[134].mxu0 }
 0x3a4   :  { %v2182_v43 = vpop.f32.mrb[135].mxu0 }
 0x3d6   :  { %v1940_v38 = vpop.f32.mrb[136].mxu0 }
 0x3d7   :  { %v1941_v11 = vadd.f32 %v2180_v33, %v1940_v38  ;;  %v2279_v39 = vpop.f32.mrb[137].mxu0 }
 0x3d8   :  { %v1943_v56 = vpop.f32.mrb[138].mxu0 }
 0x3d9   :  { %v2280_v57 = vpop.f32.mrb[139].mxu0  ;;  %1947 = vst.msk [vmem:[#allocation5] sm:$0x1] %vm1946_vm2, %v1941_v11 }
 0x3da   :  { %2596 = shalt.err (!%p2593_p12)
}
 0x3db   :  { %s2597_s21 = scalar_lea.hbm %s2973_s4, 16 }
 0x3dc   :  { %p2598_p13 = scmp.ne.s32.totalorder %s2973_s4, %s2597_s21  ;;  %p2601_p0 = scmp.lt.u32.totalorder %s2597_s21, %s2973_s4 }
 0x3de   :  { %p2603_p1 = pnand %p2601_p0, %p2598_p13 }
 0x3e0   :  { %2606 = shalt.err (!%p2603_p1)
}
 0x3e1   :  { %1957 = dma.vmem_to_hbm [thread:$0]  %s1955_s17, 16, %s2973_s4, [#allocation4]  }
 0x3e2   :  { %2609 = dma.done.wait [#allocation4], 16  }
 0x3e3   :  { %2610 = vsyncadd [#allocation4], 4294967280 }
 0x3e4   :  { %1961 = vsyncpa [#allocation3], 1 }
 0x3e5   :  { %1962 = vsyncpa [#allocation4], 1 }

</bundles_post_ra>
